<compile_context>
chip_gen: v6e
topology: v6e:2x2x1
jax: 0.10.0
libtpu: 0.0.40
codegen_flags: <defaults>
</compile_context>

<pallas_src>
import functools

import jax
import jax.numpy as jnp
from jax.experimental import pallas as pl
from jax.experimental.pallas import tpu as pltpu

EPS = 1e-5
K2 = 5  # cv2 kernel size


def _round_up(v, m):
    return (v + m - 1) // m * m


def _mish(v):
    # mish(x) = x * tanh(softplus(x)) = x * u / (u + 2),  u = t^2 + 2t, t = exp(x)
    # Clamp keeps exp finite; for x >= 20 the ratio is 1.0 to f32 precision.
    t = jnp.exp(jnp.minimum(v, 20.0))
    u = t * (t + 2.0)
    d = u + 2.0
    r = pl.reciprocal(d, approx=True)
    r = r * (2.0 - d * r)          # one Newton step -> rel err ~1e-7
    return v * (u * r)


def _ghost_conv_kernel(x_ref, w1_ref, b1_ref, w2c_ref, b2c_ref, out_ref, ypk_ref,
                       *, wq, hp, wp, base, div_mul, div_shift):
    # x_ref   : (Cin, N, Lq_pad)      VMEM  flattened zero-padded canvas
    # w1_ref  : (c_*Cin,)             SMEM  BN-folded 1x1 weights [o, c]
    # b1_ref  : (c_,)                 SMEM  BN-folded bias
    # w2c_ref : (c_*c_*N, 25)         VMEM  BN-folded 5x5 weights, rows (ci, o, n)
    # b2c_ref : (c_*N, 1)             VMEM  BN-folded bias column, rows (o, n)
    # out_ref : (2*c_*N, Lz_pad)      VMEM  rows [0:c_*N]=y strip, [c_*N:]=z strip
    # ypk_ref : (c_*c_*N, Lq_pad)     VMEM scratch, packed/replicated y canvas
    cin, n, lqp = x_ref.shape
    c_half = b1_ref.shape[0]
    cn = c_half * n
    lzp = out_ref.shape[1]

    # Ring/tail mask built from a lane iota (no mask operand DMA).
    # row = lane // wq via multiply-shift (exactness verified host-side).
    lane = jax.lax.broadcasted_iota(jnp.int32, (n, lqp), 1)
    row = jnp.right_shift(lane * div_mul, div_shift)
    col = lane - row * wq
    inside = (row >= 2) & (row < 2 + hp) & (col >= 2) & (col < 2 + wp)

    # ---- cv1: 1x1 conv (BN/bias pre-folded) + Mish over the whole canvas ----
    for cy in range(c_half):
        acc = jnp.zeros((n, lqp), jnp.float32) + b1_ref[cy]
        for c in range(cin):
            acc = acc + w1_ref[cy * cin + c] * x_ref[c]
        yo = jnp.where(inside, _mish(acc), 0.0)        # zeroed ring == cv2 zero pad
        # y half of the fused output, already as a concat-ready Lz strip.
        out_ref[cy * n:(cy + 1) * n, :] = yo[:, base:base + lzp]
        # Pack into sublanes, replicated once per cv2 output channel so a single
        # shifted window + vector FMA feeds every (ci, o, n) row at once.
        for oz in range(c_half):
            r0 = cy * cn + oz * n
            ypk_ref[r0:r0 + n, :] = yo

    # ---- cv2: dense 5x5 conv (BN/bias pre-folded) + Mish, sublane-packed ----
    ypk = ypk_ref[...]                                  # (c_*c_*N, Lq_pad), full sublanes
    acc = jnp.zeros((c_half * cn, lzp), jnp.float32)
    for kh in range(K2):
        for kw in range(K2):
            j = kh * K2 + kw
            s = kh * wq + kw
            # ONE unaligned lane-slice + ONE FMA per tap (shared by all rows).
            acc = acc + w2c_ref[:, j:j + 1] * ypk[:, s:s + lzp]
    # Reduce over the cv2 input channel (sublane groups of cn rows), add bias.
    zp = acc[0:cn, :]
    for ci in range(1, c_half):
        zp = zp + acc[ci * cn:(ci + 1) * cn, :]
    out_ref[cn:2 * cn, :] = _mish(zp + b2c_ref[...])


def ghost_conv(x, params):
    (w1, b1, g1, be1, m1, v1, w2, b2, g2, be2, m2, v2) = params
    N, Cin, H, W = x.shape
    c_half = w1.shape[0]
    Hp, Wp = H + 2, W + 2          # cv1 output spatial (1x1 conv, padding=1)
    Hq, Wq = H + 6, W + 6          # canvas: +1 (cv1 pad) +2 (cv2 zero pad of y) per side
    Lq = Hq * Wq
    Lz = (Hp - 1) * Wq + Wp        # valid strip length on the flattened canvas
    base = 2 * Wq + 2              # canvas lane of output element (0, 0)
    s_max = (K2 - 1) * Wq + (K2 - 1)

    # 128-lane padding so every load/store is a full-width vreg op.
    Lz_pad = _round_up(max(Lz, Hp * Wq), 128)   # >= Hp*Wq: host unpack needs no pad op
    Lq_pad = _round_up(max(Lq, s_max + Lz_pad, base + Lz_pad), 128)
    # Window reads must stay inside valid (zero-padded) canvas data.
    assert s_max + Lz_pad <= Lq_pad, (s_max, Lz_pad, Lq_pad)
    assert base + Lz_pad <= Lq_pad, (base, Lz_pad, Lq_pad)
    assert Hp * Wq <= Lz_pad, (Hp * Wq, Lz_pad)

    # Exact floor-division by Wq via multiply-shift (no vector int divide on TPU).
    DIV_SHIFT = 20
    div_mul = ((1 << DIV_SHIFT) + Wq - 1) // Wq
    assert (Lq_pad - 1) * div_mul < 2 ** 31
    assert all(((l * div_mul) >> DIV_SHIFT) == l // Wq for l in range(Lq_pad))

    # ---- fold eval-mode BN and conv bias into effective weights / biases ----
    s1 = g1 * jax.lax.rsqrt(v1 + EPS)
    w1e = (w1 * s1[:, None]).reshape(-1).astype(jnp.float32)
    b1e = ((b1 - m1) * s1 + be1).astype(jnp.float32)
    s2 = g2 * jax.lax.rsqrt(v2 + EPS)
    w2e = (w2 * s2[:, None, None, None]).astype(jnp.float32)   # [o, ci, kh, kw]
    b2e = ((b2 - m2) * s2 + be2).astype(jnp.float32)

    # cv2 weights as per-sublane columns: rows (ci, o, n), cols kh*5+kw.
    w2cols = jnp.transpose(w2e, (1, 0, 2, 3)).reshape(c_half, c_half, 1, K2 * K2)
    w2cols = jnp.broadcast_to(w2cols, (c_half, c_half, N, K2 * K2))
    w2cols = w2cols.reshape(c_half * c_half * N, K2 * K2)
    b2col = jnp.repeat(b2e, N).reshape(c_half * N, 1)

    # ---- lane-dense input: (Cin, N, Lq_pad), flattened zero-padded canvas ----
    # TODO(synk): at realistic sizes fold this pad/transpose into the kernel via
    #             manual DMA from NCHW HBM (memory_space=pl.ANY).
    xq = jnp.transpose(x.astype(jnp.float32), (1, 0, 2, 3))
    xq = jnp.pad(xq, ((0, 0), (0, 0), (3, 3), (3, 3))).reshape(Cin, N, Lq)
    xq = jnp.pad(xq, ((0, 0), (0, 0), (0, Lq_pad - Lq)))

    out8 = pl.pallas_call(
        functools.partial(_ghost_conv_kernel, wq=Wq, hp=Hp, wp=Wp, base=base,
                          div_mul=div_mul, div_shift=DIV_SHIFT),
        out_shape=jax.ShapeDtypeStruct((2 * c_half * N, Lz_pad), jnp.float32),
        in_specs=[
            pl.BlockSpec(memory_space=pltpu.MemorySpace.VMEM),   # xq
            pl.BlockSpec(memory_space=pltpu.MemorySpace.SMEM),   # w1e
            pl.BlockSpec(memory_space=pltpu.MemorySpace.SMEM),   # b1e
            pl.BlockSpec(memory_space=pltpu.MemorySpace.VMEM),   # w2cols
            pl.BlockSpec(memory_space=pltpu.MemorySpace.VMEM),   # b2col
        ],
        out_specs=pl.BlockSpec(memory_space=pltpu.MemorySpace.VMEM),
        scratch_shapes=[pltpu.VMEM((c_half * c_half * N, Lq_pad), jnp.float32)],
    )(xq, w1e, b1e, w2cols, b2col)

    # ---- cheap host unpack: reshape/slice/transpose only (no pad, no concat) ----
    out = out8.reshape(2 * c_half, N, Lz_pad)[:, :, :Hp * Wq]
    out = out.reshape(2 * c_half, N, Hp, Wq)[:, :, :, :Wp]
    return jnp.transpose(out, (1, 0, 2, 3))               # (N, 2c_, Hp, Wp)


def reference(x, params):
    """Pure-JAX reference (eval-mode BN), same literal semantics."""
    (w1, b1, g1, be1, m1, v1, w2, b2, g2, be2, m2, v2) = params
    c_half = w1.shape[0]
    Cin = x.shape[1]

    def bn(t, g, b, m, v):
        return ((t - m[None, :, None, None])
                * jax.lax.rsqrt(v + EPS)[None, :, None, None]
                * g[None, :, None, None] + b[None, :, None, None])

    def mish(t):
        return t * jnp.tanh(jax.nn.softplus(t))

    y = jax.lax.conv_general_dilated(
        x, w1.reshape(c_half, Cin, 1, 1), window_strides=(1, 1),
        padding=((1, 1), (1, 1)),
        dimension_numbers=('NCHW', 'OIHW', 'NCHW'),
        precision=jax.lax.Precision.HIGHEST)
    y = mish(bn(y + b1[None, :, None, None], g1, be1, m1, v1))

    z = jax.lax.conv_general_dilated(
        y, w2, window_strides=(1, 1), padding=((2, 2), (2, 2)),
        dimension_numbers=('NCHW', 'OIHW', 'NCHW'),
        precision=jax.lax.Precision.HIGHEST)
    z = mish(bn(z + b2[None, :, None, None], g2, be2, m2, v2))
    return jnp.concatenate([y, z], axis=1)


if __name__ == "__main__":
    key = jax.random.PRNGKey(0)
    N, Cin, H, W = 2, 4, 16, 16
    Cout = 4                      # out_channels; c_ = 2 (required for a valid concat)
    c_half = Cout // 2

    ks = jax.random.split(key, 13)
    x = jax.random.normal(ks[0], (N, Cin, H, W), jnp.float32)
    w1 = 0.3 * jax.random.normal(ks[1], (c_half, Cin), jnp.float32)
    b1 = 0.1 * jax.random.normal(ks[2], (c_half,), jnp.float32)
    g1 = 1.0 + 0.1 * jax.random.normal(ks[3], (c_half,), jnp.float32)
    be1 = 0.1 * jax.random.normal(ks[4], (c_half,), jnp.float32)
    m1 = 0.1 * jax.random.normal(ks[5], (c_half,), jnp.float32)
    v1 = 0.5 + 0.5 * jnp.abs(jax.random.normal(ks[6], (c_half,), jnp.float32))
    w2 = 0.1 * jax.random.normal(ks[7], (c_half, c_half, K2, K2), jnp.float32)
    b2 = 0.1 * jax.random.normal(ks[8], (c_half,), jnp.float32)
    g2 = 1.0 + 0.1 * jax.random.normal(ks[9], (c_half,), jnp.float32)
    be2 = 0.1 * jax.random.normal(ks[10], (c_half,), jnp.float32)
    m2 = 0.1 * jax.random.normal(ks[11], (c_half,), jnp.float32)
    v2 = 0.5 + 0.5 * jnp.abs(jax.random.normal(ks[12], (c_half,), jnp.float32))
    params = (w1, b1, g1, be1, m1, v1, w2, b2, g2, be2, m2, v2)

    out = jax.block_until_ready(ghost_conv(x, params))
    ref = jax.block_until_ready(reference(x, params))

    assert out.shape == (N, Cout, H + 2, W + 2), out.shape
    max_err = float(jnp.max(jnp.abs(out - ref)))
    assert max_err < 1e-3, f"max_err={max_err}"
    print("KERNEL_OK")
</pallas_src>

<mosaic_0001>
module attributes {stable_mosaic.version = 11 : i64} {
  func.func @_ghost_conv_kernel(%arg0: memref<4x2x640xf32, #tpu.memory_space<vmem>>, %arg1: memref<8xf32, #tpu.memory_space<smem>>, %arg2: memref<2xf32, #tpu.memory_space<smem>>, %arg3: memref<8x25xf32, #tpu.memory_space<vmem>>, %arg4: memref<4x1xf32, #tpu.memory_space<vmem>>, %arg5: memref<8x512xf32, #tpu.memory_space<vmem>>, %arg6: memref<8x640xf32, #tpu.memory_space<vmem>>) attributes {dimension_semantics = [], scalar_prefetch = 0 : i64, scratch_operands = 1 : i64, tpu.core_type = #tpu.core_type<tc>} {
    %0 = tpu.iota {dimensions = array<i32: 1>} : vector<2x640xi32>
    %c47663_i32 = arith.constant 47663 : i32
    %1 = vector.broadcast %c47663_i32 : i32 to vector<2x640xi32>
    %2 = arith.muli %0, %1 : vector<2x640xi32>
    %c20_i32 = arith.constant 20 : i32
    %3 = vector.broadcast %c20_i32 : i32 to vector<2x640xi32>
    %4 = arith.shrsi %2, %3 : vector<2x640xi32>
    %c22_i32 = arith.constant 22 : i32
    %5 = vector.broadcast %c22_i32 : i32 to vector<2x640xi32>
    %6 = arith.muli %4, %5 : vector<2x640xi32>
    %7 = arith.subi %0, %6 : vector<2x640xi32>
    %c2_i32 = arith.constant 2 : i32
    %8 = vector.broadcast %c2_i32 : i32 to vector<2x640xi32>
    %9 = arith.cmpi sge, %4, %8 : vector<2x640xi32>
    %c20_i32_0 = arith.constant 20 : i32
    %10 = vector.broadcast %c20_i32_0 : i32 to vector<2x640xi32>
    %11 = arith.cmpi slt, %4, %10 : vector<2x640xi32>
    %12 = arith.andi %9, %11 : vector<2x640xi1>
    %c2_i32_1 = arith.constant 2 : i32
    %13 = vector.broadcast %c2_i32_1 : i32 to vector<2x640xi32>
    %14 = arith.cmpi sge, %7, %13 : vector<2x640xi32>
    %15 = arith.andi %12, %14 : vector<2x640xi1>
    %c20_i32_2 = arith.constant 20 : i32
    %16 = vector.broadcast %c20_i32_2 : i32 to vector<2x640xi32>
    %17 = arith.cmpi slt, %7, %16 : vector<2x640xi32>
    %18 = arith.andi %15, %17 : vector<2x640xi1>
    %cst = arith.constant 0.000000e+00 : f32
    %19 = vector.broadcast %cst : f32 to vector<2x640xf32>
    %c0 = arith.constant 0 : index
    %20 = memref.load %arg2[%c0] : memref<2xf32, #tpu.memory_space<smem>>
    %21 = vector.broadcast %20 : f32 to vector<2x640xf32>
    %22 = arith.addf %19, %21 : vector<2x640xf32>
    %c0_3 = arith.constant 0 : index
    %23 = memref.load %arg1[%c0_3] : memref<8xf32, #tpu.memory_space<smem>>
    %c0_4 = arith.constant 0 : index
    %c0_5 = arith.constant 0 : index
    %c0_6 = arith.constant 0 : index
    %24 = vector.load %arg0[%c0_4, %c0_5, %c0_6] : memref<4x2x640xf32, #tpu.memory_space<vmem>>, vector<1x2x640xf32>
    %25 = vector.shape_cast %24 : vector<1x2x640xf32> to vector<2x640xf32>
    %26 = vector.broadcast %23 : f32 to vector<2x640xf32>
    %27 = arith.mulf %26, %25 : vector<2x640xf32>
    %28 = arith.addf %22, %27 : vector<2x640xf32>
    %c1 = arith.constant 1 : index
    %29 = memref.load %arg1[%c1] : memref<8xf32, #tpu.memory_space<smem>>
    %c1_7 = arith.constant 1 : index
    %c0_8 = arith.constant 0 : index
    %c0_9 = arith.constant 0 : index
    %30 = vector.load %arg0[%c1_7, %c0_8, %c0_9] : memref<4x2x640xf32, #tpu.memory_space<vmem>>, vector<1x2x640xf32>
    %31 = vector.shape_cast %30 : vector<1x2x640xf32> to vector<2x640xf32>
    %32 = vector.broadcast %29 : f32 to vector<2x640xf32>
    %33 = arith.mulf %32, %31 : vector<2x640xf32>
    %34 = arith.addf %28, %33 : vector<2x640xf32>
    %c2 = arith.constant 2 : index
    %35 = memref.load %arg1[%c2] : memref<8xf32, #tpu.memory_space<smem>>
    %c2_10 = arith.constant 2 : index
    %c0_11 = arith.constant 0 : index
    %c0_12 = arith.constant 0 : index
    %36 = vector.load %arg0[%c2_10, %c0_11, %c0_12] : memref<4x2x640xf32, #tpu.memory_space<vmem>>, vector<1x2x640xf32>
    %37 = vector.shape_cast %36 : vector<1x2x640xf32> to vector<2x640xf32>
    %38 = vector.broadcast %35 : f32 to vector<2x640xf32>
    %39 = arith.mulf %38, %37 : vector<2x640xf32>
    %40 = arith.addf %34, %39 : vector<2x640xf32>
    %c3 = arith.constant 3 : index
    %41 = memref.load %arg1[%c3] : memref<8xf32, #tpu.memory_space<smem>>
    %c3_13 = arith.constant 3 : index
    %c0_14 = arith.constant 0 : index
    %c0_15 = arith.constant 0 : index
    %42 = vector.load %arg0[%c3_13, %c0_14, %c0_15] : memref<4x2x640xf32, #tpu.memory_space<vmem>>, vector<1x2x640xf32>
    %43 = vector.shape_cast %42 : vector<1x2x640xf32> to vector<2x640xf32>
    %44 = vector.broadcast %41 : f32 to vector<2x640xf32>
    %45 = arith.mulf %44, %43 : vector<2x640xf32>
    %46 = arith.addf %40, %45 : vector<2x640xf32>
    %cst_16 = arith.constant 2.000000e+01 : f32
    %47 = vector.broadcast %cst_16 : f32 to vector<2x640xf32>
    %48 = arith.minimumf %46, %47 : vector<2x640xf32>
    %49 = math.exp %48 : vector<2x640xf32>
    %cst_17 = arith.constant 2.000000e+00 : f32
    %50 = vector.broadcast %cst_17 : f32 to vector<2x640xf32>
    %51 = arith.addf %49, %50 : vector<2x640xf32>
    %52 = arith.mulf %49, %51 : vector<2x640xf32>
    %cst_18 = arith.constant 2.000000e+00 : f32
    %53 = vector.broadcast %cst_18 : f32 to vector<2x640xf32>
    %54 = arith.addf %52, %53 : vector<2x640xf32>
    %55 = tpu.reciprocal %54 {approx = true} : vector<2x640xf32> -> vector<2x640xf32>
    %56 = arith.mulf %54, %55 : vector<2x640xf32>
    %cst_19 = arith.constant 2.000000e+00 : f32
    %57 = vector.broadcast %cst_19 : f32 to vector<2x640xf32>
    %58 = arith.subf %57, %56 : vector<2x640xf32>
    %59 = arith.mulf %55, %58 : vector<2x640xf32>
    %60 = arith.mulf %52, %59 : vector<2x640xf32>
    %61 = arith.mulf %46, %60 : vector<2x640xf32>
    %cst_20 = arith.constant 0.000000e+00 : f32
    %62 = vector.broadcast %cst_20 : f32 to vector<2x640xf32>
    %63 = arith.select %18, %61, %62 : vector<2x640xi1>, vector<2x640xf32>
    %64 = vector.extract_strided_slice %63 {offsets = [0, 46], sizes = [2, 512], strides = [1, 1]} : vector<2x640xf32> to vector<2x512xf32>
    %c0_21 = arith.constant 0 : index
    %c0_22 = arith.constant 0 : index
    %65 = vector.load %arg5[%c0_21, %c0_22] : memref<8x512xf32, #tpu.memory_space<vmem>>, vector<2x512xf32>
    tpu.vector_store %arg5[%c0_21, %c0_22], %64 {strides = array<i32>} : memref<8x512xf32, #tpu.memory_space<vmem>>, vector<2x512xf32>,
    %c0_23 = arith.constant 0 : index
    %c0_24 = arith.constant 0 : index
    %66 = vector.load %arg6[%c0_23, %c0_24] : memref<8x640xf32, #tpu.memory_space<vmem>>, vector<2x640xf32>
    tpu.vector_store %arg6[%c0_23, %c0_24], %63 {strides = array<i32>} : memref<8x640xf32, #tpu.memory_space<vmem>>, vector<2x640xf32>,
    %c2_25 = arith.constant 2 : index
    %c0_26 = arith.constant 0 : index
    %67 = vector.load %arg6[%c2_25, %c0_26] : memref<8x640xf32, #tpu.memory_space<vmem>>, vector<2x640xf32>
    tpu.vector_store %arg6[%c2_25, %c0_26], %63 {strides = array<i32>} : memref<8x640xf32, #tpu.memory_space<vmem>>, vector<2x640xf32>,
    %cst_27 = arith.constant 0.000000e+00 : f32
    %68 = vector.broadcast %cst_27 : f32 to vector<2x640xf32>
    %c1_28 = arith.constant 1 : index
    %69 = memref.load %arg2[%c1_28] : memref<2xf32, #tpu.memory_space<smem>>
    %70 = vector.broadcast %69 : f32 to vector<2x640xf32>
    %71 = arith.addf %68, %70 : vector<2x640xf32>
    %c4 = arith.constant 4 : index
    %72 = memref.load %arg1[%c4] : memref<8xf32, #tpu.memory_space<smem>>
    %c0_29 = arith.constant 0 : index
    %c0_30 = arith.constant 0 : index
    %c0_31 = arith.constant 0 : index
    %73 = vector.load %arg0[%c0_29, %c0_30, %c0_31] : memref<4x2x640xf32, #tpu.memory_space<vmem>>, vector<1x2x640xf32>
    %74 = vector.shape_cast %73 : vector<1x2x640xf32> to vector<2x640xf32>
    %75 = vector.broadcast %72 : f32 to vector<2x640xf32>
    %76 = arith.mulf %75, %74 : vector<2x640xf32>
    %77 = arith.addf %71, %76 : vector<2x640xf32>
    %c5 = arith.constant 5 : index
    %78 = memref.load %arg1[%c5] : memref<8xf32, #tpu.memory_space<smem>>
    %c1_32 = arith.constant 1 : index
    %c0_33 = arith.constant 0 : index
    %c0_34 = arith.constant 0 : index
    %79 = vector.load %arg0[%c1_32, %c0_33, %c0_34] : memref<4x2x640xf32, #tpu.memory_space<vmem>>, vector<1x2x640xf32>
    %80 = vector.shape_cast %79 : vector<1x2x640xf32> to vector<2x640xf32>
    %81 = vector.broadcast %78 : f32 to vector<2x640xf32>
    %82 = arith.mulf %81, %80 : vector<2x640xf32>
    %83 = arith.addf %77, %82 : vector<2x640xf32>
    %c6 = arith.constant 6 : index
    %84 = memref.load %arg1[%c6] : memref<8xf32, #tpu.memory_space<smem>>
    %c2_35 = arith.constant 2 : index
    %c0_36 = arith.constant 0 : index
    %c0_37 = arith.constant 0 : index
    %85 = vector.load %arg0[%c2_35, %c0_36, %c0_37] : memref<4x2x640xf32, #tpu.memory_space<vmem>>, vector<1x2x640xf32>
    %86 = vector.shape_cast %85 : vector<1x2x640xf32> to vector<2x640xf32>
    %87 = vector.broadcast %84 : f32 to vector<2x640xf32>
    %88 = arith.mulf %87, %86 : vector<2x640xf32>
    %89 = arith.addf %83, %88 : vector<2x640xf32>
    %c7 = arith.constant 7 : index
    %90 = memref.load %arg1[%c7] : memref<8xf32, #tpu.memory_space<smem>>
    %c3_38 = arith.constant 3 : index
    %c0_39 = arith.constant 0 : index
    %c0_40 = arith.constant 0 : index
    %91 = vector.load %arg0[%c3_38, %c0_39, %c0_40] : memref<4x2x640xf32, #tpu.memory_space<vmem>>, vector<1x2x640xf32>
    %92 = vector.shape_cast %91 : vector<1x2x640xf32> to vector<2x640xf32>
    %93 = vector.broadcast %90 : f32 to vector<2x640xf32>
    %94 = arith.mulf %93, %92 : vector<2x640xf32>
    %95 = arith.addf %89, %94 : vector<2x640xf32>
    %cst_41 = arith.constant 2.000000e+01 : f32
    %96 = vector.broadcast %cst_41 : f32 to vector<2x640xf32>
    %97 = arith.minimumf %95, %96 : vector<2x640xf32>
    %98 = math.exp %97 : vector<2x640xf32>
    %cst_42 = arith.constant 2.000000e+00 : f32
    %99 = vector.broadcast %cst_42 : f32 to vector<2x640xf32>
    %100 = arith.addf %98, %99 : vector<2x640xf32>
    %101 = arith.mulf %98, %100 : vector<2x640xf32>
    %cst_43 = arith.constant 2.000000e+00 : f32
    %102 = vector.broadcast %cst_43 : f32 to vector<2x640xf32>
    %103 = arith.addf %101, %102 : vector<2x640xf32>
    %104 = tpu.reciprocal %103 {approx = true} : vector<2x640xf32> -> vector<2x640xf32>
    %105 = arith.mulf %103, %104 : vector<2x640xf32>
    %cst_44 = arith.constant 2.000000e+00 : f32
    %106 = vector.broadcast %cst_44 : f32 to vector<2x640xf32>
    %107 = arith.subf %106, %105 : vector<2x640xf32>
    %108 = arith.mulf %104, %107 : vector<2x640xf32>
    %109 = arith.mulf %101, %108 : vector<2x640xf32>
    %110 = arith.mulf %95, %109 : vector<2x640xf32>
    %cst_45 = arith.constant 0.000000e+00 : f32
    %111 = vector.broadcast %cst_45 : f32 to vector<2x640xf32>
    %112 = arith.select %18, %110, %111 : vector<2x640xi1>, vector<2x640xf32>
    %113 = vector.extract_strided_slice %112 {offsets = [0, 46], sizes = [2, 512], strides = [1, 1]} : vector<2x640xf32> to vector<2x512xf32>
    %c2_46 = arith.constant 2 : index
    %c0_47 = arith.constant 0 : index
    %114 = vector.load %arg5[%c2_46, %c0_47] : memref<8x512xf32, #tpu.memory_space<vmem>>, vector<2x512xf32>
    tpu.vector_store %arg5[%c2_46, %c0_47], %113 {strides = array<i32>} : memref<8x512xf32, #tpu.memory_space<vmem>>, vector<2x512xf32>,
    %c4_48 = arith.constant 4 : index
    %c0_49 = arith.constant 0 : index
    %115 = vector.load %arg6[%c4_48, %c0_49] : memref<8x640xf32, #tpu.memory_space<vmem>>, vector<2x640xf32>
    tpu.vector_store %arg6[%c4_48, %c0_49], %112 {strides = array<i32>} : memref<8x640xf32, #tpu.memory_space<vmem>>, vector<2x640xf32>,
    %c6_50 = arith.constant 6 : index
    %c0_51 = arith.constant 0 : index
    %116 = vector.load %arg6[%c6_50, %c0_51] : memref<8x640xf32, #tpu.memory_space<vmem>>, vector<2x640xf32>
    tpu.vector_store %arg6[%c6_50, %c0_51], %112 {strides = array<i32>} : memref<8x640xf32, #tpu.memory_space<vmem>>, vector<2x640xf32>,
    %c0_52 = arith.constant 0 : index
    %c0_53 = arith.constant 0 : index
    %117 = vector.load %arg6[%c0_52, %c0_53] : memref<8x640xf32, #tpu.memory_space<vmem>>, vector<8x640xf32>
    %cst_54 = arith.constant 0.000000e+00 : f32
    %118 = vector.broadcast %cst_54 : f32 to vector<8x512xf32>
    %c0_55 = arith.constant 0 : index
    %c0_56 = arith.constant 0 : index
    %119 = vector.load %arg3[%c0_55, %c0_56] : memref<8x25xf32, #tpu.memory_space<vmem>>, vector<8x1xf32>
    %120 = vector.extract_strided_slice %117 {offsets = [0, 0], sizes = [8, 512], strides = [1, 1]} : vector<8x640xf32> to vector<8x512xf32>
    %121 = vector.broadcast %119 : vector<8x1xf32> to vector<8x512xf32>
    %122 = arith.mulf %121, %120 : vector<8x512xf32>
    %123 = arith.addf %118, %122 : vector<8x512xf32>
    %c0_57 = arith.constant 0 : index
    %c1_58 = arith.constant 1 : index
    %124 = vector.load %arg3[%c0_57, %c1_58] : memref<8x25xf32, #tpu.memory_space<vmem>>, vector<8x1xf32>
    %125 = vector.extract_strided_slice %117 {offsets = [0, 1], sizes = [8, 512], strides = [1, 1]} : vector<8x640xf32> to vector<8x512xf32>
    %126 = vector.broadcast %124 : vector<8x1xf32> to vector<8x512xf32>
    %127 = arith.mulf %126, %125 : vector<8x512xf32>
    %128 = arith.addf %123, %127 : vector<8x512xf32>
    %c0_59 = arith.constant 0 : index
    %c2_60 = arith.constant 2 : index
    %129 = vector.load %arg3[%c0_59, %c2_60] : memref<8x25xf32, #tpu.memory_space<vmem>>, vector<8x1xf32>
    %130 = vector.extract_strided_slice %117 {offsets = [0, 2], sizes = [8, 512], strides = [1, 1]} : vector<8x640xf32> to vector<8x512xf32>
    %131 = vector.broadcast %129 : vector<8x1xf32> to vector<8x512xf32>
    %132 = arith.mulf %131, %130 : vector<8x512xf32>
    %133 = arith.addf %128, %132 : vector<8x512xf32>
    %c0_61 = arith.constant 0 : index
    %c3_62 = arith.constant 3 : index
    %134 = vector.load %arg3[%c0_61, %c3_62] : memref<8x25xf32, #tpu.memory_space<vmem>>, vector<8x1xf32>
    %135 = vector.extract_strided_slice %117 {offsets = [0, 3], sizes = [8, 512], strides = [1, 1]} : vector<8x640xf32> to vector<8x512xf32>
    %136 = vector.broadcast %134 : vector<8x1xf32> to vector<8x512xf32>
    %137 = arith.mulf %136, %135 : vector<8x512xf32>
    %138 = arith.addf %133, %137 : vector<8x512xf32>
    %c0_63 = arith.constant 0 : index
    %c4_64 = arith.constant 4 : index
    %139 = vector.load %arg3[%c0_63, %c4_64] : memref<8x25xf32, #tpu.memory_space<vmem>>, vector<8x1xf32>
    %140 = vector.extract_strided_slice %117 {offsets = [0, 4], sizes = [8, 512], strides = [1, 1]} : vector<8x640xf32> to vector<8x512xf32>
    %141 = vector.broadcast %139 : vector<8x1xf32> to vector<8x512xf32>
    %142 = arith.mulf %141, %140 : vector<8x512xf32>
    %143 = arith.addf %138, %142 : vector<8x512xf32>
    %c0_65 = arith.constant 0 : index
    %c5_66 = arith.constant 5 : index
    %144 = vector.load %arg3[%c0_65, %c5_66] : memref<8x25xf32, #tpu.memory_space<vmem>>, vector<8x1xf32>
    %145 = vector.extract_strided_slice %117 {offsets = [0, 22], sizes = [8, 512], strides = [1, 1]} : vector<8x640xf32> to vector<8x512xf32>
    %146 = vector.broadcast %144 : vector<8x1xf32> to vector<8x512xf32>
    %147 = arith.mulf %146, %145 : vector<8x512xf32>
    %148 = arith.addf %143, %147 : vector<8x512xf32>
    %c0_67 = arith.constant 0 : index
    %c6_68 = arith.constant 6 : index
    %149 = vector.load %arg3[%c0_67, %c6_68] : memref<8x25xf32, #tpu.memory_space<vmem>>, vector<8x1xf32>
    %150 = vector.extract_strided_slice %117 {offsets = [0, 23], sizes = [8, 512], strides = [1, 1]} : vector<8x640xf32> to vector<8x512xf32>
    %151 = vector.broadcast %149 : vector<8x1xf32> to vector<8x512xf32>
    %152 = arith.mulf %151, %150 : vector<8x512xf32>
    %153 = arith.addf %148, %152 : vector<8x512xf32>
    %c0_69 = arith.constant 0 : index
    %c7_70 = arith.constant 7 : index
    %154 = vector.load %arg3[%c0_69, %c7_70] : memref<8x25xf32, #tpu.memory_space<vmem>>, vector<8x1xf32>
    %155 = vector.extract_strided_slice %117 {offsets = [0, 24], sizes = [8, 512], strides = [1, 1]} : vector<8x640xf32> to vector<8x512xf32>
    %156 = vector.broadcast %154 : vector<8x1xf32> to vector<8x512xf32>
    %157 = arith.mulf %156, %155 : vector<8x512xf32>
    %158 = arith.addf %153, %157 : vector<8x512xf32>
    %c0_71 = arith.constant 0 : index
    %c8 = arith.constant 8 : index
    %159 = vector.load %arg3[%c0_71, %c8] : memref<8x25xf32, #tpu.memory_space<vmem>>, vector<8x1xf32>
    %160 = vector.extract_strided_slice %117 {offsets = [0, 25], sizes = [8, 512], strides = [1, 1]} : vector<8x640xf32> to vector<8x512xf32>
    %161 = vector.broadcast %159 : vector<8x1xf32> to vector<8x512xf32>
    %162 = arith.mulf %161, %160 : vector<8x512xf32>
    %163 = arith.addf %158, %162 : vector<8x512xf32>
    %c0_72 = arith.constant 0 : index
    %c9 = arith.constant 9 : index
    %164 = vector.load %arg3[%c0_72, %c9] : memref<8x25xf32, #tpu.memory_space<vmem>>, vector<8x1xf32>
    %165 = vector.extract_strided_slice %117 {offsets = [0, 26], sizes = [8, 512], strides = [1, 1]} : vector<8x640xf32> to vector<8x512xf32>
    %166 = vector.broadcast %164 : vector<8x1xf32> to vector<8x512xf32>
    %167 = arith.mulf %166, %165 : vector<8x512xf32>
    %168 = arith.addf %163, %167 : vector<8x512xf32>
    %c0_73 = arith.constant 0 : index
    %c10 = arith.constant 10 : index
    %169 = vector.load %arg3[%c0_73, %c10] : memref<8x25xf32, #tpu.memory_space<vmem>>, vector<8x1xf32>
    %170 = vector.extract_strided_slice %117 {offsets = [0, 44], sizes = [8, 512], strides = [1, 1]} : vector<8x640xf32> to vector<8x512xf32>
    %171 = vector.broadcast %169 : vector<8x1xf32> to vector<8x512xf32>
    %172 = arith.mulf %171, %170 : vector<8x512xf32>
    %173 = arith.addf %168, %172 : vector<8x512xf32>
    %c0_74 = arith.constant 0 : index
    %c11 = arith.constant 11 : index
    %174 = vector.load %arg3[%c0_74, %c11] : memref<8x25xf32, #tpu.memory_space<vmem>>, vector<8x1xf32>
    %175 = vector.extract_strided_slice %117 {offsets = [0, 45], sizes = [8, 512], strides = [1, 1]} : vector<8x640xf32> to vector<8x512xf32>
    %176 = vector.broadcast %174 : vector<8x1xf32> to vector<8x512xf32>
    %177 = arith.mulf %176, %175 : vector<8x512xf32>
    %178 = arith.addf %173, %177 : vector<8x512xf32>
    %c0_75 = arith.constant 0 : index
    %c12 = arith.constant 12 : index
    %179 = vector.load %arg3[%c0_75, %c12] : memref<8x25xf32, #tpu.memory_space<vmem>>, vector<8x1xf32>
    %180 = vector.extract_strided_slice %117 {offsets = [0, 46], sizes = [8, 512], strides = [1, 1]} : vector<8x640xf32> to vector<8x512xf32>
    %181 = vector.broadcast %179 : vector<8x1xf32> to vector<8x512xf32>
    %182 = arith.mulf %181, %180 : vector<8x512xf32>
    %183 = arith.addf %178, %182 : vector<8x512xf32>
    %c0_76 = arith.constant 0 : index
    %c13 = arith.constant 13 : index
    %184 = vector.load %arg3[%c0_76, %c13] : memref<8x25xf32, #tpu.memory_space<vmem>>, vector<8x1xf32>
    %185 = vector.extract_strided_slice %117 {offsets = [0, 47], sizes = [8, 512], strides = [1, 1]} : vector<8x640xf32> to vector<8x512xf32>
    %186 = vector.broadcast %184 : vector<8x1xf32> to vector<8x512xf32>
    %187 = arith.mulf %186, %185 : vector<8x512xf32>
    %188 = arith.addf %183, %187 : vector<8x512xf32>
    %c0_77 = arith.constant 0 : index
    %c14 = arith.constant 14 : index
    %189 = vector.load %arg3[%c0_77, %c14] : memref<8x25xf32, #tpu.memory_space<vmem>>, vector<8x1xf32>
    %190 = vector.extract_strided_slice %117 {offsets = [0, 48], sizes = [8, 512], strides = [1, 1]} : vector<8x640xf32> to vector<8x512xf32>
    %191 = vector.broadcast %189 : vector<8x1xf32> to vector<8x512xf32>
    %192 = arith.mulf %191, %190 : vector<8x512xf32>
    %193 = arith.addf %188, %192 : vector<8x512xf32>
    %c0_78 = arith.constant 0 : index
    %c15 = arith.constant 15 : index
    %194 = vector.load %arg3[%c0_78, %c15] : memref<8x25xf32, #tpu.memory_space<vmem>>, vector<8x1xf32>
    %195 = vector.extract_strided_slice %117 {offsets = [0, 66], sizes = [8, 512], strides = [1, 1]} : vector<8x640xf32> to vector<8x512xf32>
    %196 = vector.broadcast %194 : vector<8x1xf32> to vector<8x512xf32>
    %197 = arith.mulf %196, %195 : vector<8x512xf32>
    %198 = arith.addf %193, %197 : vector<8x512xf32>
    %c0_79 = arith.constant 0 : index
    %c16 = arith.constant 16 : index
    %199 = vector.load %arg3[%c0_79, %c16] : memref<8x25xf32, #tpu.memory_space<vmem>>, vector<8x1xf32>
    %200 = vector.extract_strided_slice %117 {offsets = [0, 67], sizes = [8, 512], strides = [1, 1]} : vector<8x640xf32> to vector<8x512xf32>
    %201 = vector.broadcast %199 : vector<8x1xf32> to vector<8x512xf32>
    %202 = arith.mulf %201, %200 : vector<8x512xf32>
    %203 = arith.addf %198, %202 : vector<8x512xf32>
    %c0_80 = arith.constant 0 : index
    %c17 = arith.constant 17 : index
    %204 = vector.load %arg3[%c0_80, %c17] : memref<8x25xf32, #tpu.memory_space<vmem>>, vector<8x1xf32>
    %205 = vector.extract_strided_slice %117 {offsets = [0, 68], sizes = [8, 512], strides = [1, 1]} : vector<8x640xf32> to vector<8x512xf32>
    %206 = vector.broadcast %204 : vector<8x1xf32> to vector<8x512xf32>
    %207 = arith.mulf %206, %205 : vector<8x512xf32>
    %208 = arith.addf %203, %207 : vector<8x512xf32>
    %c0_81 = arith.constant 0 : index
    %c18 = arith.constant 18 : index
    %209 = vector.load %arg3[%c0_81, %c18] : memref<8x25xf32, #tpu.memory_space<vmem>>, vector<8x1xf32>
    %210 = vector.extract_strided_slice %117 {offsets = [0, 69], sizes = [8, 512], strides = [1, 1]} : vector<8x640xf32> to vector<8x512xf32>
    %211 = vector.broadcast %209 : vector<8x1xf32> to vector<8x512xf32>
    %212 = arith.mulf %211, %210 : vector<8x512xf32>
    %213 = arith.addf %208, %212 : vector<8x512xf32>
    %c0_82 = arith.constant 0 : index
    %c19 = arith.constant 19 : index
    %214 = vector.load %arg3[%c0_82, %c19] : memref<8x25xf32, #tpu.memory_space<vmem>>, vector<8x1xf32>
    %215 = vector.extract_strided_slice %117 {offsets = [0, 70], sizes = [8, 512], strides = [1, 1]} : vector<8x640xf32> to vector<8x512xf32>
    %216 = vector.broadcast %214 : vector<8x1xf32> to vector<8x512xf32>
    %217 = arith.mulf %216, %215 : vector<8x512xf32>
    %218 = arith.addf %213, %217 : vector<8x512xf32>
    %c0_83 = arith.constant 0 : index
    %c20 = arith.constant 20 : index
    %219 = vector.load %arg3[%c0_83, %c20] : memref<8x25xf32, #tpu.memory_space<vmem>>, vector<8x1xf32>
    %220 = vector.extract_strided_slice %117 {offsets = [0, 88], sizes = [8, 512], strides = [1, 1]} : vector<8x640xf32> to vector<8x512xf32>
    %221 = vector.broadcast %219 : vector<8x1xf32> to vector<8x512xf32>
    %222 = arith.mulf %221, %220 : vector<8x512xf32>
    %223 = arith.addf %218, %222 : vector<8x512xf32>
    %c0_84 = arith.constant 0 : index
    %c21 = arith.constant 21 : index
    %224 = vector.load %arg3[%c0_84, %c21] : memref<8x25xf32, #tpu.memory_space<vmem>>, vector<8x1xf32>
    %225 = vector.extract_strided_slice %117 {offsets = [0, 89], sizes = [8, 512], strides = [1, 1]} : vector<8x640xf32> to vector<8x512xf32>
    %226 = vector.broadcast %224 : vector<8x1xf32> to vector<8x512xf32>
    %227 = arith.mulf %226, %225 : vector<8x512xf32>
    %228 = arith.addf %223, %227 : vector<8x512xf32>
    %c0_85 = arith.constant 0 : index
    %c22 = arith.constant 22 : index
    %229 = vector.load %arg3[%c0_85, %c22] : memref<8x25xf32, #tpu.memory_space<vmem>>, vector<8x1xf32>
    %230 = vector.extract_strided_slice %117 {offsets = [0, 90], sizes = [8, 512], strides = [1, 1]} : vector<8x640xf32> to vector<8x512xf32>
    %231 = vector.broadcast %229 : vector<8x1xf32> to vector<8x512xf32>
    %232 = arith.mulf %231, %230 : vector<8x512xf32>
    %233 = arith.addf %228, %232 : vector<8x512xf32>
    %c0_86 = arith.constant 0 : index
    %c23 = arith.constant 23 : index
    %234 = vector.load %arg3[%c0_86, %c23] : memref<8x25xf32, #tpu.memory_space<vmem>>, vector<8x1xf32>
    %235 = vector.extract_strided_slice %117 {offsets = [0, 91], sizes = [8, 512], strides = [1, 1]} : vector<8x640xf32> to vector<8x512xf32>
    %236 = vector.broadcast %234 : vector<8x1xf32> to vector<8x512xf32>
    %237 = arith.mulf %236, %235 : vector<8x512xf32>
    %238 = arith.addf %233, %237 : vector<8x512xf32>
    %c0_87 = arith.constant 0 : index
    %c24 = arith.constant 24 : index
    %239 = vector.load %arg3[%c0_87, %c24] : memref<8x25xf32, #tpu.memory_space<vmem>>, vector<8x1xf32>
    %240 = vector.extract_strided_slice %117 {offsets = [0, 92], sizes = [8, 512], strides = [1, 1]} : vector<8x640xf32> to vector<8x512xf32>
    %241 = vector.broadcast %239 : vector<8x1xf32> to vector<8x512xf32>
    %242 = arith.mulf %241, %240 : vector<8x512xf32>
    %243 = arith.addf %238, %242 : vector<8x512xf32>
    %244 = vector.extract_strided_slice %243 {offsets = [0, 0], sizes = [4, 512], strides = [1, 1]} : vector<8x512xf32> to vector<4x512xf32>
    %245 = vector.extract_strided_slice %243 {offsets = [4, 0], sizes = [4, 512], strides = [1, 1]} : vector<8x512xf32> to vector<4x512xf32>
    %246 = arith.addf %244, %245 : vector<4x512xf32>
    %c0_88 = arith.constant 0 : index
    %c0_89 = arith.constant 0 : index
    %247 = vector.load %arg4[%c0_88, %c0_89] : memref<4x1xf32, #tpu.memory_space<vmem>>, vector<4x1xf32>
    %248 = vector.broadcast %247 : vector<4x1xf32> to vector<4x512xf32>
    %249 = arith.addf %246, %248 : vector<4x512xf32>
    %cst_90 = arith.constant 2.000000e+01 : f32
    %250 = vector.broadcast %cst_90 : f32 to vector<4x512xf32>
    %251 = arith.minimumf %249, %250 : vector<4x512xf32>
    %252 = math.exp %251 : vector<4x512xf32>
    %cst_91 = arith.constant 2.000000e+00 : f32
    %253 = vector.broadcast %cst_91 : f32 to vector<4x512xf32>
    %254 = arith.addf %252, %253 : vector<4x512xf32>
    %255 = arith.mulf %252, %254 : vector<4x512xf32>
    %cst_92 = arith.constant 2.000000e+00 : f32
    %256 = vector.broadcast %cst_92 : f32 to vector<4x512xf32>
    %257 = arith.addf %255, %256 : vector<4x512xf32>
    %258 = tpu.reciprocal %257 {approx = true} : vector<4x512xf32> -> vector<4x512xf32>
    %259 = arith.mulf %257, %258 : vector<4x512xf32>
    %cst_93 = arith.constant 2.000000e+00 : f32
    %260 = vector.broadcast %cst_93 : f32 to vector<4x512xf32>
    %261 = arith.subf %260, %259 : vector<4x512xf32>
    %262 = arith.mulf %258, %261 : vector<4x512xf32>
    %263 = arith.mulf %255, %262 : vector<4x512xf32>
    %264 = arith.mulf %249, %263 : vector<4x512xf32>
    %c4_94 = arith.constant 4 : index
    %c0_95 = arith.constant 0 : index
    %265 = vector.load %arg5[%c4_94, %c0_95] : memref<8x512xf32, #tpu.memory_space<vmem>>, vector<4x512xf32>
    tpu.vector_store %arg5[%c4_94, %c0_95], %264 {strides = array<i32>} : memref<8x512xf32, #tpu.memory_space<vmem>>, vector<4x512xf32>,
    return
  }
}

</mosaic_0001>

<bundles_post_ra>
// kernel: tpu_custom_call.1
= control target key start
LH: loop header
LB: loop body
LE: loop exit
PB: predicated region body
PF: predicated region fallthrough
CT: control target
= control target key end

     0   :  { %10 = vsyncpa [#allocation4], 0  ;;  %s2461_s0 = inlined_call_operand.hbm [shape: f32[4,2,640], index: 0, kind: input, shape index: {}]   ;;  %s2462_s1 = inlined_call_operand.vmem [shape: f32[8], index: 1, kind: input, shape index: {}]   ;;  %s2463_s2 = inlined_call_operand.vmem [shape: f32[2], index: 2, kind: input, shape index: {}]   ;;  %s2464_s3 = inlined_call_operand.vmem [shape: f32[8,25], index: 3, kind: input, shape index: {}]   ;;  %s2465_s4 = inlined_call_operand.vmem [shape: f32[4,1], index: 4, kind: input, shape index: {}]   ;;  %s2466_s5 = inlined_call_operand.hbm [shape: f32[8,512], index: 5, kind: output, shape index: {}]  }
   0x1   :  { %11 = vsyncpa [#allocation6], 0 }
   0x2   :  { %12 = vsyncpa [#allocation9], 0 }
   0x3   :  { %13 = vsyncpa [#allocation5], 0  ;;  %s1636_s18 = smov [#allocation3]   ;;  %s32_s22 = sshll.u32 %s2462_s1, 4  ;;  %s33_s22 = int_to_ptr.vmem [resolvable:$true] %s32_s22 }
   0x4   :  { %s19_s19 = sshll.u32 %s1636_s18, 4  ;;  %s20_s19 = int_to_ptr.vmem [resolvable:$true] %s19_s19 }
   0x5   :  { %s1572_s23 = scalar_lea.vmem %s20_s19, 640  ;;  %p1577_p1 = scmp.lt.s32.totalorder %s20_s19, %s20_s19 }
   0x6   :  { %p1573_p0 = scmp.ne.s32.totalorder %s20_s19, %s1572_s23  ;;  %p1578_p2 = scmp.lt.s32.totalorder %s1572_s23, %s1572_s23 }
   0x8   :  { %p1579_p3 = por %p1578_p2, %p1577_p1 }
   0xa   :  { %p1580_p4 = pnand %p1579_p3, %p1573_p0 }
   0xc   :  { %1583 = shalt.err (!%p1580_p4)
}
   0xd   :  { %s1637_s24 = smov 160   ;;  %s1638_s25 = smov 10  }
   0xe   :  { %25 = dma.hbm_to_vmem [thread:$0]  %s2461_s0, 640, %s20_s19, [#allocation4], %s1637_s24, %s1637_s24, %s1638_s25  }
   0xf   :  { %s1584_s28 = scalar_lea.vmem %s33_s22, 16  ;;  %p1589_p6 = scmp.lt.s32.totalorder %s33_s22, %s33_s22 }
  0x10   :  { %p1585_p5 = scmp.ne.s32.totalorder %s33_s22, %s1584_s28  ;;  %p1590_p7 = scmp.lt.s32.totalorder %s1584_s28, %s1584_s28 }
  0x12   :  { %p1591_p8 = por %p1590_p7, %p1589_p6 }
  0x14   :  { %p1592_p9 = pnand %p1591_p8, %p1585_p5 }
  0x16   :  { %1595 = shalt.err (!%p1592_p9)
}
  0x17   :  { %s1639_s1 = smov [#allocation7]   ;;  %s42_s6 = sshll.u32 %s2463_s2, 4  ;;  %s43_s6 = int_to_ptr.vmem [resolvable:$true] %s42_s6 }
  0x18   :  { %35 = dma.vmem_to_smem %s33_s22, 16, %s1639_s1, [#allocation6]  }
  0x19   :  { %s1596_s7 = scalar_lea.vmem %s43_s6, 16  ;;  %p1601_p11 = scmp.lt.s32.totalorder %s43_s6, %s43_s6 }
  0x1a   :  { %p1597_p10 = scmp.ne.s32.totalorder %s43_s6, %s1596_s7  ;;  %p1602_p12 = scmp.lt.s32.totalorder %s1596_s7, %s1596_s7 }
  0x1c   :  { %p1603_p13 = por %p1602_p12, %p1601_p11 }
  0x1e   :  { %p1604_p0 = pnand %p1603_p13, %p1597_p10 }
  0x20   :  { %1607 = shalt.err (!%p1604_p0)
}
  0x21   :  { %s1640_s0 = smov [#allocation8]  }
  0x22   :  { %45 = dma.vmem_to_smem %s43_s6, 16, %s1640_s0, [#allocation9]  }
  0x23   :  { %1628 = dma.done.wait [#allocation4], 640  }
  0x24   :  { %1629 = vsyncadd [#allocation4], 4294966656 }
  0x25   :  { %1630 = dma.done.wait [#allocation6], 16  }
  0x26   :  { %1631 = vsyncadd [#allocation6], 4294967280 }
  0x27   :  { %1632 = dma.done.wait [#allocation9], 16  }
  0x28   :  { %1633 = vsyncadd [#allocation9], 4294967280 }
  0x29   :  { %59 = sfence }
  0x2a   :  { %v1734_v0 = vld [vmem:[%s2464_s3] sm:$0xff]  ;;  %v1641_v1 = vmov 1   ;;  %v1642_v2 = vmov 2   ;;  %s1736_s2 = sld [smem:[#allocation8]]  ;;  %v1643_v3 = vmov 3   ;;  %v125_v4 = vld [vmem:[#allocation3] sm:$0xff] }
  0x2b   :  { %1501 = vset.pattern.permute.xlu1 %v1641_v1  ;;  %1502 = vset.pattern.permute.xlu0 %v1642_v2  ;;  %s1740_s10 = sld [smem:[#allocation7]]  ;;  %v134_v5 = vld [vmem:[#allocation3 + $0xa] sm:$0xff]  ;;  %v143_v8 = vld [vmem:[#allocation3 + $0x14] sm:$0xff]  ;;  %v152_v13 = vld [vmem:[#allocation3 + $0x1e] sm:$0xff]  ;;  %v1644_v14 = vmov 4   ;;  %v1645_v30 = vmov 5  }
  0x2c   :  { %444 = vperm.xlu1 %1501, %v1734_v0   ;;  %481 = vperm.xlu0 %1502, %v1734_v0   ;;  %s1742_s11 = sld [smem:[#allocation7 + $0x1]]  ;;  %v126_v18 = vld [vmem:[#allocation3 + $0x8] sm:$0x3]  ;;  %v135_v29 = vld [vmem:[#allocation3 + $0x12] sm:$0x3]  ;;  %v1646_v49 = vmov 6  }
  0x2d   :  { %s1744_s12 = sld [smem:[#allocation7 + $0x2]]  ;;  %v144_v35 = vld [vmem:[#allocation3 + $0x1c] sm:$0x3]  ;;  %v153_v36 = vld [vmem:[#allocation3 + $0x26] sm:$0x3]  ;;  %v1647_v62 = vmov 7  }
  0x2e   :  { %s1746_s13 = sld [smem:[#allocation7 + $0x3]]  ;;  %v272_v41 = vld [vmem:[#allocation3 + $0x8] sm:$0x3]  ;;  %v280_v42 = vld [vmem:[#allocation3 + $0x12] sm:$0x3]  ;;  %s1651_s19 = smov 82  }
  0x2f   :  { %s1748_s14 = sld [smem:[#allocation8 + $0x1]]  ;;  %v288_v48 = vld [vmem:[#allocation3 + $0x1c] sm:$0x3]  ;;  %v296_v55 = vld [vmem:[#allocation3 + $0x26] sm:$0x3]  ;;  %s1653_s20 = smov 127  }
  0x30   :  { %1503 = vset.pattern.permute.xlu1 %v1643_v3  ;;  %s1751_s15 = sld [smem:[#allocation7 + $0x4]]  ;;  %v122_v6 = vstv %s1736_s2  ;;  %s1654_s21 = smov 126  }
  0x31   :  { %518 = vperm.xlu1 %1503, %v1734_v0   ;;  %v127_v7 = vstv %s1740_s10  ;;  %s1755_s16 = sld [smem:[#allocation7 + $0x5]]  ;;  %s1655_s22 = smov 125  }
  0x32   :  { %v128_v9 = vmul.f32 %v127_v7, %v125_v4  ;;  %v136_v10 = vstv %s1742_s11  ;;  %s1758_s17 = sld [smem:[#allocation7 + $0x6]]  ;;  %v129_v25 = vmul.f32 %v127_v7, %v126_v18  ;;  %s1656_s23 = smov 124  }
  0x33   :  { %v137_v11 = vmul.f32 %v136_v10, %v134_v5  ;;  %v145_v12 = vstv %s1744_s12  ;;  %s1761_s18 = sld [smem:[#allocation7 + $0x7]]  ;;  %v138_v40 = vmul.f32 %v136_v10, %v135_v29  ;;  %s1657_s24 = smov 106  }
  0x34   :  { %v130_v15 = vadd.f32 %v128_v9, %v122_v6  ;;  %v146_v16 = vmul.f32 %v145_v12, %v143_v8  ;;  %v154_v17 = vstv %s1746_s13  ;;  %v131_v39 = vadd.f32 %v129_v25, %v122_v6  ;;  %s1658_s25 = smov 105   ;;  %s1659_s26 = smov 104  }
  0x35   :  { %1504 = vset.pattern.permute.xlu1 %v1644_v14  ;;  %v155_v20 = vmul.f32 %v154_v17, %v152_v13  ;;  %v268_v21 = vstv %s1748_s14  ;;  %v147_v46 = vmul.f32 %v145_v12, %v144_v35  ;;  %v156_v47 = vmul.f32 %v154_v17, %v153_v36  ;;  %s1660_s27 = smov 103   ;;  %s1661_s28 = smov 102  }
  0x36   :  { %555 = vperm.xlu1 %1504, %v1734_v0   ;;  %v139_v19 = vadd.f32 %v137_v11, %v130_v15  ;;  %v273_v22 = vstv %s1751_s15  ;;  %v140_v45 = vadd.f32 %v138_v40, %v131_v39  ;;  %v1648_v6 = vmov 8   ;;  %s1672_s1 = smov 84   ;;  %s1674_s6 = smov 83  }
  0x37   :  { %v274_v23 = vmul.f32 %v273_v22, %v125_v4  ;;  %v281_v24 = vstv %s1755_s16  ;;  %v275_v51 = vmul.f32 %v273_v22, %v272_v41  ;;  %v60_v4 = vlaneseq  ;;  %s1680_s7 = smov 80   ;;  %s1681_s0 = smov 62  }
  0x38   :  { %v148_v26 = vadd.f32 %v146_v16, %v139_v19  ;;  %v282_v27 = vmul.f32 %v281_v24, %v134_v5  ;;  %v289_v28 = vstv %s1758_s17  ;;  %v283_v52 = vmul.f32 %v281_v24, %v280_v42  ;;  %s1682_s8 = smov 61   ;;  %s1683_s9 = smov 60  }
  0x39   :  { %v276_v31 = vadd.f32 %v274_v23, %v268_v21  ;;  %v290_v32 = vmul.f32 %v289_v28, %v143_v8  ;;  %v297_v34 = vstv %s1761_s18  ;;  %v149_v54 = vadd.f32 %v147_v46, %v140_v45  ;;  %s1684_s2 = smov 59   ;;  %s1685_s10 = smov 58  }
  0x3a   :  { %1505 = vset.pattern.permute.xlu1 %v1645_v30  ;;  %v1770_v33 = vadd.f32 %v155_v20, %v148_v26  ;;  %v298_v38 = vmul.f32 %v297_v34, %v152_v13  ;;  %v277_v56 = vadd.f32 %v275_v51, %v268_v21  ;;  %v291_v57 = vmul.f32 %v289_v28, %v288_v48  ;;  %s1686_s11 = smov 40   ;;  %s1687_s12 = smov 39  }
  0x3b   :  { %592 = vperm.xlu1 %1505, %v1734_v0   ;;  %v284_v37 = vadd.f32 %v282_v27, %v276_v31  ;;  %v1778_v59 = vadd.f32 %v156_v47, %v149_v54  ;;  %v299_v61 = vmul.f32 %v297_v34, %v296_v55  ;;  %v61_v8 = vand.u32 127, %v60_v4  ;;  %s1688_s13 = smov 38   ;;  %s1689_s14 = smov 37  }
  0x3c   :  { %v159_v43 = vmin.f32 %v1770_v33, 20.0  ;;  %v285_v60 = vadd.f32 %v283_v52, %v277_v56  ;;  %v1649_v11 = vmov 9   ;;  %v190_v56 = vshrl.u32 %v60_v4, 7  ;;  %s1690_s15 = smov 36  }
  0x3d   :  { %v292_v44 = vadd.f32 %v290_v32, %v284_v37  ;;  %v160_v1 = vmin.f32 %v1778_v59, 20.0  ;;  %v63_v12 = vadd.s32 256, %v61_v8  ;;  %v66_v19 = vmul.u32 47663, %v61_v8 }
  0x3e   :  { %v161_v50 = vmul.f32 1.442695, %v159_v43  ;;  %v293_v2 = vadd.f32 %v291_v57, %v285_v60  ;;  %v62_v20 = vadd.s32 128, %v61_v8  ;;  %v64_v24 = vadd.s32 384, %v61_v8 }
  0x3f   :  { %1506 = vset.pattern.permute.xlu1 %v1646_v49  ;;  %v1775_v53 = vadd.f32 %v298_v38, %v292_v44  ;;  %v163_v3 = vmul.f32 1.442695, %v160_v1  ;;  %v68_v16 = vmul.u32 47663, %v63_v12  ;;  %v71_v27 = vshra.s32 %v66_v19, 20 }
  0x40   :  { %629 = vperm.xlu1 %1506, %v1734_v0   ;;  %1526 = vpow2.f32 %v161_v50  ;;  %v1782_v5 = vadd.f32 %v299_v61, %v293_v2  ;;  %v67_v29 = vmul.u32 47663, %v62_v20  ;;  %v65_v31 = vadd.s32 512, %v61_v8 }
  0x41   :  { %v302_v58 = vmin.f32 %v1775_v53, 20.0  ;;  %v73_v25 = vshra.s32 %v68_v16, 20  ;;  %v69_v34 = vmul.u32 47663, %v64_v24  ;;  %v76_v37 = vmul.u32 22, %v71_v27 }
  0x42   :  { %v303_v7 = vmin.f32 %v1782_v5, 20.0  ;;  %v72_v38 = vshra.s32 %v67_v29, 20  ;;  %v70_v40 = vmul.u32 47663, %v65_v31  ;;  %vm86_vm2 = vcmp.ge.s32.totalorder %v71_v27, 2 }
  0x43   :  { %v304_v63 = vmul.f32 1.442695, %v302_v58  ;;  %v78_v35 = vmul.u32 22, %v73_v25  ;;  %v74_v41 = vshra.s32 %v69_v34, 20  ;;  %vm88_vm0 = vcmp.ge.s32.totalorder %v73_v25, 2 }
  0x44   :  { %1507 = vset.pattern.permute.xlu1 %v1647_v62  ;;  %v306_v9 = vmul.f32 1.442695, %v303_v7  ;;  %vm93_vm1 = vcmp.lt.s32.totalorder %v73_v25, 20  ;;  %v81_v44 = vsub.s32 %v61_v8, %v76_v37  ;;  %v77_v45 = vmul.u32 22, %v72_v38 }
  0x45   :  { %666 = vperm.xlu1 %1507, %v1734_v0   ;;  %1528 = vpow2.f32 %v304_v63  ;;  %v83_v42 = vsub.s32 %v63_v12, %v78_v35  ;;  %vm91_vm3 = vcmp.lt.s32.totalorder %v71_v27, 20  ;;  %v75_v47 = vshra.s32 %v70_v40, 20  ;;  %vm98_vm4 = vmand %vm88_vm0, %vm93_vm1 }
  0x46   :  { %1530 = vpow2.f32 %v163_v3  ;;  %v79_v48 = vmul.u32 22, %v74_v41  ;;  %v1650_v50 = vmov 1983009808   ;;  %vm96_vm6 = vmand %vm86_vm2, %vm91_vm3  ;;  %vm101_vm7 = vcmp.ge.s32.totalorder %v81_v44, 2 }
  0x47   :  { %1532 = vpow2.f32 %v306_v9  ;;  %vm103_vm5 = vcmp.ge.s32.totalorder %v83_v42, 2  ;;  %v187_v51 = vunpack.c.l.s4 %v1650_v50  ;;  %v82_v52 = vsub.s32 %v62_v20, %v77_v45  ;;  %vm1808_vm12 = vmand %vm96_vm6, %vm101_vm7 }
  0x48   :  { %vm87_vm8 = vcmp.ge.s32.totalorder %v72_v38, 2  ;;  %vm92_vm9 = vcmp.lt.s32.totalorder %v72_v38, 20  ;;  %vm1803_vm10 = vmand %vm98_vm4, %vm103_vm5  ;;  %vm113_vm11 = vcmp.lt.s32.totalorder %v83_v42, 20  ;;  %v80_v57 = vmul.u32 22, %v75_v47 }
  0x49   :  { %1508 = vset.pattern.permute.xlu1 %v1648_v6  ;;  %v84_v58 = vsub.s32 %v64_v24, %v79_v48  ;;  %v188_v62 = vunpack.c.0.s8 %v187_v51  ;;  %vm89_vm13 = vcmp.ge.s32.totalorder %v74_v41, 2  ;;  %vm94_vm14 = vcmp.lt.s32.totalorder %v74_v41, 20  ;;  %vm97_vm15 = vmand %vm87_vm8, %vm92_vm9 }
  0x4a   :  { %703 = vperm.xlu1 %1508, %v1734_v0   ;;  %vm102_vm0 = vcmp.ge.s32.totalorder %v82_v52, 2  ;;  %vm1814_vm1 = vmand %vm1803_vm10, %vm113_vm11  ;;  %vm111_vm2 = vcmp.lt.s32.totalorder %v81_v44, 20  ;;  %v85_v7 = vsub.s32 %v65_v31, %v80_v57  ;;  %vm112_vm6 = vcmp.lt.s32.totalorder %v82_v52, 20 }
  0x4b   :  { %vm99_vm3 = vmand %vm89_vm13, %vm94_vm14  ;;  %vm104_vm4 = vcmp.ge.s32.totalorder %v84_v58, 2  ;;  %vm90_vm8 = vcmp.ge.s32.totalorder %v75_v47, 2  ;;  %vm95_vm9 = vcmp.lt.s32.totalorder %v75_v47, 20  ;;  %vm114_vm11 = vcmp.lt.s32.totalorder %v84_v58, 20 }
  0x4c   :  { %vm1822_vm5 = vmand %vm97_vm15, %vm102_vm0  ;;  %vm105_vm13 = vcmp.ge.s32.totalorder %v85_v7, 2  ;;  %vm115_vm15 = vcmp.lt.s32.totalorder %v85_v7, 20  ;;  %v1652_v3 = vmov 10  }
  0x4d   :  { %v1527_v10 = vpop.eup %1526  ;;  %vm1828_vm7 = vmand %vm1808_vm12, %vm111_vm2 }
  0x4e   :  { %1509 = vset.pattern.permute.xlu1 %v1649_v11  ;;  %v165_v13 = vadd.f32 2.0, %v1527_v10  ;;  %vm1833_vm10 = vmand %vm99_vm3, %vm104_vm4  ;;  %vm763_vm4 = vcmask 834560  }
  0x4f   :  { %740 = vperm.xlu1 %1509, %v1734_v0   ;;  %vm1840_vm12 = vmand %vm1822_vm5, %vm112_vm6  ;;  %vm800_vm5 = vcmask 687104   ;;  %vm467_vm6 = vcmask 1039360  }
  0x50   :  { %v1788_v14 = vmul.f32 %v1527_v10, %v165_v13  ;;  %v1820_v10 = vsub.s32 %v188_v62, %v190_v56  ;;  %vm1847_vm14 = vmand %vm90_vm8, %vm95_vm9  ;;  %vm541_vm8 = vcmask 1022976   ;;  %vm578_vm9 = vcmask 1014784  }
  0x51   :  { %vm1858_vm0 = vmand %vm1833_vm10, %vm114_vm11  ;;  %vm615_vm10 = vcmask 867328   ;;  %vm652_vm11 = vcmask 859136  }
  0x52   :  { %v1529_v15 = vpop.eup %1528  ;;  %v169_v17 = vadd.f32 2.0, %v1788_v14  ;;  %vm1871_vm2 = vmand %vm1847_vm14, %vm105_vm13  ;;  %vm689_vm13 = vcmask 850944   ;;  %vm726_vm14 = vcmask 842752  }
  0x53   :  { %v308_v18 = vadd.f32 2.0, %v1529_v15  ;;  %v1531_v21 = vpop.eup %1530  ;;  %vm1885_vm3 = vmand %vm1871_vm2, %vm115_vm15  ;;  %1510 = vset.pattern.permute.xlu1 %v1652_v3  ;;  %vm910_vm15 = vcmask 662528   ;;  %vm984_vm2 = vcmask 506880  }
  0x54   :  { %1534 = vrcp.f32 %v169_v17  ;;  %v166_v23 = vadd.f32 2.0, %v1531_v21  ;;  %v1533_v30 = vpop.eup %1532 }
  0x55   :  { %v1791_v22 = vmul.f32 %v1529_v15, %v308_v18  ;;  %v309_v36 = vadd.f32 2.0, %v1533_v30 }
  0x56   :  { %v1794_v28 = vmul.f32 %v1531_v21, %v166_v23 }
  0x57   :  { %v312_v26 = vadd.f32 2.0, %v1791_v22  ;;  %v1797_v39 = vmul.f32 %v1533_v30, %v309_v36 }
  0x58   :  { %v170_v32 = vadd.f32 2.0, %v1794_v28 }
  0x59   :  { %1536 = vrcp.f32 %v312_v26  ;;  %v1800_v43 = vadd.f32 2.0, %v1797_v39 }
  0x5a   :  { %1538 = vrcp.f32 %v170_v32 }
  0x5b   :  { %1540 = vrcp.f32 %v1800_v43 }
  0x61   :  { %v1535_v46 = vpop.eup %1534 }
  0x62   :  { %v173_v49 = vmul.f32 %v1535_v46, %v169_v17 }
  0x64   :  { %v175_v54 = vsub.f32 2.0, %v173_v49 }
  0x66   :  { %v1537_v60 = vpop.eup %1536  ;;  %v177_v61 = vmul.f32 %v1535_v46, %v175_v54 }
  0x67   :  { %v316_v1 = vmul.f32 %v1537_v60, %v312_v26  ;;  %v1539_v2 = vpop.eup %1538 }
  0x68   :  { %v179_v4 = vmul.f32 %v177_v61, %v1788_v14  ;;  %v174_v8 = vmul.f32 %v1539_v2, %v170_v32  ;;  %v1541_v17 = vpop.eup %1540 }
  0x69   :  { %v318_v6 = vsub.f32 2.0, %v316_v1  ;;  %v317_v25 = vmul.f32 %v1541_v17, %v1800_v43 }
  0x6a   :  { %v181_v9 = vmul.f32 %v179_v4, %v1770_v33  ;;  %v176_v14 = vsub.f32 2.0, %v174_v8 }
  0x6b   :  { %v320_v12 = vmul.f32 %v1537_v60, %v318_v6  ;;  %v319_v32 = vsub.f32 2.0, %v317_v25 }
  0x6c   :  { %v185_v15 = vcombine.high %v181_v9, %v181_v9  ;;  %v192_v33 = vrot.slane %v181_v9, %v1820_v10  ;;  %v178_v19 = vmul.f32 %v1539_v2, %v176_v14 }
  0x6d   :  { %v322_v18 = vmul.f32 %v320_v12, %v1791_v22  ;;  %v321_v40 = vmul.f32 %v1541_v17, %v319_v32 }
  0x6e   :  { %v199_v21 = vrot.slane %v185_v15, %v1820_v10  ;;  %v214_v23 = vsel %vm1828_vm7, %v192_v33, 0.0  ;;  %v200_v22 = vcombine.high %v192_v33, %v192_v33  ;;  %v180_v29 = vmul.f32 %v178_v19, %v1794_v28 }
  0x6f   :  { %v324_v26 = vmul.f32 %v322_v18, %v1775_v53  ;;  %224 = vrot.lane.b32.xlu0 %v214_v23, %s1651_s19  ;;  %247 = vst [vmem:[#allocation2 + $0x8] sm:$0x3] %v214_v23  ;;  %v252_v27 = vrot.slane %v214_v23, 6  ;;  %v323_v50 = vmul.f32 %v321_v40, %v1797_v39 }
  0x70   :  { %v216_v31 = vsel %vm1814_vm1, %v199_v21, 0.0  ;;  %v201_v53 = vcombine.high %v199_v21, %v199_v21  ;;  %v215_v34 = vsel %vm1840_vm12, %v200_v22, 0.0  ;;  %v182_v38 = vmul.f32 %v180_v29, %v1778_v59 }
  0x71   :  { %v328_v35 = vcombine.high %v324_v26, %v324_v26  ;;  %228 = vrot.lane.b32.xlu1 %v216_v31, %s1651_s19  ;;  %249 = vst [vmem:[#allocation2 + $0x20] sm:$0x3] %v216_v31  ;;  %v254_v28 = vrot.slane %v216_v31, 6  ;;  %v335_v36 = vrot.slane %v324_v26, %v1820_v10  ;;  %262 = vst [vmem:[#allocation2 + $0x8] sm:$0xc] %v252_v27  ;;  %v253_v42 = vrot.slane %v215_v34, 6 }
  0x72   :  { %248 = vst [vmem:[#allocation2] sm:$0x3] %v215_v34  ;;  %v217_v41 = vsel %vm1858_vm0, %v201_v53, 0.0  ;;  %v208_v45 = vrot.slane %v182_v38, %v1820_v10  ;;  %v325_v58 = vmul.f32 %v323_v50, %v1782_v5 }
  0x73   :  { %v342_v43 = vrot.slane %v328_v35, %v1820_v10  ;;  %264 = vst [vmem:[#allocation2 + $0x20] sm:$0xc] %v254_v28  ;;  %v357_v44 = vsel %vm1828_vm7, %v335_v36, 0.0  ;;  %250 = vst [vmem:[#allocation2 + $0x10] sm:$0x3] %v217_v41  ;;  %v255_v46 = vrot.slane %v217_v41, 6  ;;  %v343_v55 = vcombine.high %v335_v36, %v335_v36 }
  0x74   :  { %v394_v47 = vrot.slane %v357_v44, 4  ;;  %v409_v48 = vrot.slane %v357_v44, 2  ;;  %v367_v49 = vrot.slane %v357_v44, 6  ;;  %263 = vst [vmem:[#allocation2] sm:$0xc] %v253_v42  ;;  %v218_v52 = vsel %vm1885_vm3, %v208_v45, 0.0 }
  0x75   :  { %v359_v51 = vsel %vm1814_vm1, %v342_v43, 0.0  ;;  %265 = vst [vmem:[#allocation2 + $0x10] sm:$0xc] %v255_v46  ;;  %v344_v54 = vcombine.high %v342_v43, %v342_v43  ;;  %232 = vrot.lane.b32.xlu0 %v218_v52, %s1651_s19  ;;  %251 = vst [vmem:[#allocation2 + $0x18] sm:$0x3] %v218_v52  ;;  %v256_v39 = vrot.slane %v218_v52, 6  ;;  %v351_v62 = vrot.slane %v325_v58, %v1820_v10 }
  0x76   :  { %v396_v56 = vrot.slane %v359_v51, 4  ;;  %v411_v57 = vrot.slane %v359_v51, 2  ;;  %404 = vst [vmem:[#allocation2 + $0x8] sm:$0x30] %v394_v47  ;;  %419 = vst [vmem:[#allocation2 + $0x8] sm:$0xc0] %v409_v48  ;;  %372 = vrot.lane.b32.xlu1 %v367_v49, %s1651_s19 }
  0x77   :  { %v360_v60 = vsel %vm1858_vm0, %v344_v54, 0.0  ;;  %v358_v61 = vsel %vm1840_vm12, %v343_v55, 0.0  ;;  %266 = vst [vmem:[#allocation2 + $0x18] sm:$0xc] %v256_v39  ;;  %v361_v4 = vsel %vm1885_vm3, %v351_v62, 0.0  ;;  %v369_v11 = vrot.slane %v359_v51, 6 }
  0x78   :  { %406 = vst [vmem:[#allocation2 + $0x20] sm:$0x30] %v396_v56  ;;  %421 = vst [vmem:[#allocation2 + $0x20] sm:$0xc0] %v411_v57  ;;  %v397_v63 = vrot.slane %v360_v60, 4  ;;  %v412_v1 = vrot.slane %v360_v60, 2 }
  0x79   :  { %v395_v2 = vrot.slane %v358_v61, 4  ;;  %v410_v5 = vrot.slane %v358_v61, 2  ;;  %226 = vrot.lane.b32.xlu0 %v215_v34, %s1651_s19  ;;  %v368_v6 = vrot.slane %v358_v61, 6  ;;  %v398_v7 = vrot.slane %v361_v4, 4 }
  0x7a   :  { %407 = vst [vmem:[#allocation2 + $0x10] sm:$0x30] %v397_v63  ;;  %422 = vst [vmem:[#allocation2 + $0x10] sm:$0xc0] %v412_v1  ;;  %v413_v8 = vrot.slane %v361_v4, 2  ;;  %v371_v9 = vrot.slane %v361_v4, 6 }
  0x7b   :  { %405 = vst [vmem:[#allocation2] sm:$0x30] %v395_v2  ;;  %420 = vst [vmem:[#allocation2] sm:$0xc0] %v410_v5  ;;  %v370_v10 = vrot.slane %v360_v60, 6  ;;  %vm234_vm1 = vcmask 670720  }
  0x7c   :  { %408 = vst [vmem:[#allocation2 + $0x18] sm:$0x30] %v398_v7  ;;  %423 = vst [vmem:[#allocation2 + $0x18] sm:$0xc0] %v413_v8  ;;  %380 = vrot.lane.b32.xlu1 %v371_v9, %s1651_s19  ;;  %vm504_vm7 = vcmask 1031168   ;;  %vm837_vm12 = vcmask 678912  }
  0x7d   :  { %374 = vrot.lane.b32.xlu0 %v368_v6, %s1651_s19  ;;  %v1910_v12 = vld [vmem:[#allocation2 + $0x8] sm:$0xff]  ;;  %vm947_vm0 = vcmask 654336   ;;  %vm1021_vm3 = vcmask 498688  }
  0x7f   :  { %v1916_v16 = vld [vmem:[#allocation2 + $0x20] sm:$0xff] }
  0x80   :  { %230 = vrot.lane.b32.xlu1 %v217_v41, %s1651_s19 }
  0x81   :  { %378 = vrot.lane.b32.xlu0 %v370_v10, %s1651_s19  ;;  %v1918_v17 = vld [vmem:[#allocation2 + $0x10] sm:$0xff] }
  0x82   :  { %v1912_v13 = vld [vmem:[#allocation2] sm:$0xff] }
  0x83   :  { %v1922_v21 = vld [vmem:[#allocation2 + $0x18] sm:$0xff] }
  0x84   :  { %376 = vrot.lane.b32.xlu1 %v369_v11, %s1651_s19 }
  0xa7   :  { %v445_v14 = vpop.permute.xlu1 %444  ;;  %v482_v18 = vpop.permute.xlu0 %481 }
  0xa8   :  { %v447_v15 = vmul.f32 %v445_v14, %v1910_v12  ;;  %v448_v33 = vmul.f32 %v445_v14, %v1912_v13  ;;  %v449_v19 = vmul.f32 %v445_v14, %v1916_v16  ;;  %v450_v20 = vmul.f32 %v445_v14, %v1918_v17 }
  0xa9   :  { %v486_v23 = vmul.f32 %v482_v18, %v1916_v16  ;;  %v451_v24 = vmul.f32 %v445_v14, %v1922_v21  ;;  %v484_v25 = vmul.f32 %v482_v18, %v1910_v12  ;;  %v488_v22 = vmul.f32 %v482_v18, %v1922_v21 }
  0xaa   :  { %457 = vrot.lane.b32.xlu1 %v447_v15, %s1653_s20  ;;  %459 = vrot.lane.b32.xlu0 %v448_v33, %s1653_s20  ;;  %v485_v29 = vmul.f32 %v482_v18, %v1912_v13  ;;  %v487_v31 = vmul.f32 %v482_v18, %v1918_v17 }
  0xac   :  { %v519_v26 = vpop.permute.xlu1 %518 }
  0xad   :  { %v521_v27 = vmul.f32 %v519_v26, %v1910_v12  ;;  %v523_v30 = vmul.f32 %v519_v26, %v1916_v16  ;;  %v522_v32 = vmul.f32 %v519_v26, %v1912_v13  ;;  %v525_v53 = vmul.f32 %v519_v26, %v1922_v21 }
  0xae   :  { %461 = vrot.lane.b32.xlu1 %v449_v19, %s1653_s20  ;;  %463 = vrot.lane.b32.xlu0 %v450_v20, %s1653_s20  ;;  %v524_v28 = vmul.f32 %v519_v26, %v1918_v17  ;;  %v1662_v26 = vmov 12  }
  0xaf   :  { %1512 = vset.pattern.permute.xlu0 %v1662_v26 }
  0xb1   :  { %v556_v34 = vpop.permute.xlu1 %555 }
  0xb2   :  { %465 = vrot.lane.b32.xlu1 %v451_v24, %s1653_s20  ;;  %498 = vrot.lane.b32.xlu0 %v486_v23, %s1654_s21  ;;  %v558_v35 = vmul.f32 %v556_v34, %v1910_v12  ;;  %v559_v36 = vmul.f32 %v556_v34, %v1912_v13  ;;  %v560_v37 = vmul.f32 %v556_v34, %v1916_v16 }
  0xb3   :  { %v561_v40 = vmul.f32 %v556_v34, %v1918_v17  ;;  %v562_v41 = vmul.f32 %v556_v34, %v1922_v21  ;;  %v1665_v34 = vmov 14  }
  0xb6   :  { %494 = vrot.lane.b32.xlu1 %v484_v25, %s1654_s21  ;;  %502 = vrot.lane.b32.xlu0 %v488_v22, %s1654_s21  ;;  %v593_v38 = vpop.permute.xlu1 %592 }
  0xb7   :  { %v596_v42 = vmul.f32 %v593_v38, %v1912_v13  ;;  %v595_v43 = vmul.f32 %v593_v38, %v1910_v12  ;;  %v598_v45 = vmul.f32 %v593_v38, %v1918_v17  ;;  %v597_v46 = vmul.f32 %v593_v38, %v1916_v16 }
  0xb8   :  { %v599_v48 = vmul.f32 %v593_v38, %v1922_v21 }
  0xba   :  { %496 = vrot.lane.b32.xlu1 %v485_v29, %s1654_s21  ;;  %531 = vrot.lane.b32.xlu0 %v521_v27, %s1655_s22  ;;  %v1663_v29 = vmov 11  }
  0xbb   :  { %v630_v44 = vpop.permute.xlu1 %629 }
  0xbc   :  { %v633_v47 = vmul.f32 %v630_v44, %v1912_v13  ;;  %v635_v59 = vmul.f32 %v630_v44, %v1918_v17  ;;  %v632_v50 = vmul.f32 %v630_v44, %v1910_v12  ;;  %v634_v54 = vmul.f32 %v630_v44, %v1916_v16 }
  0xbd   :  { %v636_v58 = vmul.f32 %v630_v44, %v1922_v21 }
  0xbe   :  { %500 = vrot.lane.b32.xlu1 %v487_v31, %s1654_s21  ;;  %535 = vrot.lane.b32.xlu0 %v523_v30, %s1655_s22  ;;  %v1664_v31 = vmov 13  }
  0xc0   :  { %v667_v49 = vpop.permute.xlu1 %666 }
  0xc1   :  { %v670_v52 = vmul.f32 %v667_v49, %v1912_v13  ;;  %v672_v57 = vmul.f32 %v667_v49, %v1918_v17  ;;  %v669_v61 = vmul.f32 %v667_v49, %v1910_v12  ;;  %v671_v2 = vmul.f32 %v667_v49, %v1916_v16 }
  0xc2   :  { %533 = vrot.lane.b32.xlu1 %v522_v32, %s1655_s22  ;;  %539 = vrot.lane.b32.xlu0 %v525_v53, %s1655_s22  ;;  %v673_v7 = vmul.f32 %v667_v49, %v1922_v21 }
  0xc5   :  { %v1948_v51 = vpop.permute.xlu1 %703 }
  0xc6   :  { %537 = vrot.lane.b32.xlu1 %v524_v28, %s1655_s22  ;;  %568 = vrot.lane.b32.xlu0 %v558_v35, %s1656_s23  ;;  %v707_v60 = vmul.f32 %v1948_v51, %v1912_v13  ;;  %v709_v1 = vmul.f32 %v1948_v51, %v1918_v17  ;;  %v706_v14 = vmul.f32 %v1948_v51, %v1910_v12  ;;  %v1666_v35 = vmov 16  }
  0xc7   :  { %v708_v23 = vmul.f32 %v1948_v51, %v1916_v16  ;;  %v710_v27 = vmul.f32 %v1948_v51, %v1922_v21  ;;  %v1667_v28 = vmov 17  }
  0xca   :  { %570 = vrot.lane.b32.xlu1 %v559_v36, %s1656_s23  ;;  %572 = vrot.lane.b32.xlu0 %v560_v37, %s1656_s23  ;;  %v1952_v55 = vpop.permute.xlu1 %740  ;;  %v1668_v36 = vmov 19  }
  0xcb   :  { %v744_v5 = vmul.f32 %v1952_v55, %v1912_v13  ;;  %v746_v11 = vmul.f32 %v1952_v55, %v1918_v17  ;;  %v743_v30 = vmul.f32 %v1952_v55, %v1910_v12  ;;  %v745_v32 = vmul.f32 %v1952_v55, %v1916_v16 }
  0xcc   :  { %v747_v53 = vmul.f32 %v1952_v55, %v1922_v21 }
  0xce   :  { %574 = vrot.lane.b32.xlu1 %v561_v40, %s1656_s23  ;;  %576 = vrot.lane.b32.xlu0 %v562_v41, %s1656_s23  ;;  %v1669_v40 = vmov 20  }
  0xd2   :  { %607 = vrot.lane.b32.xlu1 %v596_v42, %s1657_s24  ;;  %605 = vrot.lane.b32.xlu0 %v595_v43, %s1657_s24  ;;  %v1670_v43 = vmov 22  }
  0xd6   :  { %611 = vrot.lane.b32.xlu1 %v598_v45, %s1657_s24  ;;  %609 = vrot.lane.b32.xlu0 %v597_v46, %s1657_s24  ;;  %v1671_v46 = vmov 23  }
  0xda   :  { %644 = vrot.lane.b32.xlu1 %v633_v47, %s1658_s25  ;;  %613 = vrot.lane.b32.xlu0 %v599_v48, %s1657_s24 }
  0xde   :  { %648 = vrot.lane.b32.xlu1 %v635_v59, %s1658_s25  ;;  %642 = vrot.lane.b32.xlu0 %v632_v50, %s1658_s25 }
  0xe1   :  { %v225_v56 = vpop.permute.xlu0 %224 }
  0xe2   :  { %681 = vrot.lane.b32.xlu1 %v670_v52, %s1659_s26  ;;  %646 = vrot.lane.b32.xlu0 %v634_v54, %s1658_s25 }
  0xe3   :  { %v229_v39 = vpop.permute.xlu1 %228 }
  0xe6   :  { %685 = vrot.lane.b32.xlu1 %v672_v57, %s1659_s26  ;;  %650 = vrot.lane.b32.xlu0 %v636_v58, %s1658_s25 }
  0xe7   :  { %v233_v62 = vpop.permute.xlu0 %232 }
  0xe8   :  { %v373_v63 = vpop.permute.xlu1 %372 }
  0xea   :  { %718 = vrot.lane.b32.xlu1 %v707_v60, %s1660_s27  ;;  %679 = vrot.lane.b32.xlu0 %v669_v61, %s1659_s26 }
  0xeb   :  { %v227_v3 = vpop.permute.xlu0 %226 }
  0xec   :  { %v235_v4 = vsel %vm234_vm1, %v225_v56, %v227_v3  ;;  %v236_v6 = vsel %vm234_vm1, %v227_v3, %v229_v39 }
  0xed   :  { %243 = vst [vmem:[#allocation10] sm:$0x3] %v235_v4  ;;  %244 = vst [vmem:[#allocation10 + $0x8] sm:$0x3] %v236_v6 }
  0xee   :  { %722 = vrot.lane.b32.xlu1 %v709_v1, %s1660_s27  ;;  %683 = vrot.lane.b32.xlu0 %v671_v2, %s1659_s26  ;;  %v381_v8 = vpop.permute.xlu1 %380 }
  0xef   :  { %v375_v9 = vpop.permute.xlu0 %374 }
  0xf0   :  { %v382_v10 = vsel %vm234_vm1, %v373_v63, %v375_v9 }
  0xf1   :  { %390 = vst [vmem:[#allocation10] sm:$0xc] %v382_v10 }
  0xf2   :  { %755 = vrot.lane.b32.xlu1 %v744_v5, %s1661_s28  ;;  %687 = vrot.lane.b32.xlu0 %v673_v7, %s1659_s26  ;;  %v231_v15 = vpop.permute.xlu1 %230 }
  0xf3   :  { %v237_v33 = vsel %vm234_vm1, %v229_v39, %v231_v15  ;;  %v238_v18 = vsel %vm234_vm1, %v231_v15, %v233_v62  ;;  %v379_v19 = vpop.permute.xlu0 %378 }
  0xf4   :  { %245 = vst [vmem:[#allocation10 + $0x10] sm:$0x3] %v237_v33  ;;  %246 = vst [vmem:[#allocation10 + $0x18] sm:$0x3] %v238_v18  ;;  %v385_v20 = vsel %vm234_vm1, %v379_v19, %v381_v8 }
  0xf5   :  { %393 = vst [vmem:[#allocation10 + $0x18] sm:$0xc] %v385_v20 }
  0xf6   :  { %759 = vrot.lane.b32.xlu1 %v746_v11, %s1661_s28  ;;  %716 = vrot.lane.b32.xlu0 %v706_v14, %s1660_s27  ;;  %v377_v24 = vpop.permute.xlu1 %376 }
  0xf7   :  { %v383_v25 = vsel %vm234_vm1, %v375_v9, %v377_v24  ;;  %v384_v22 = vsel %vm234_vm1, %v377_v24, %v379_v19 }
  0xf8   :  { %391 = vst [vmem:[#allocation10 + $0x8] sm:$0xc] %v383_v25  ;;  %392 = vst [vmem:[#allocation10 + $0x10] sm:$0xc] %v384_v22 }
  0xfa   :  { %777 = vperm.xlu1 %1510, %v1734_v0   ;;  %720 = vrot.lane.b32.xlu0 %v708_v23, %s1660_s27 }
  0xfe   :  { %724 = vrot.lane.b32.xlu0 %v710_v27, %s1660_s27  ;;  %1511 = vset.pattern.permute.xlu1 %v1663_v29 }
  0xff   :  { %814 = vperm.xlu1 %1511, %v1734_v0  }
 0x102   :  { %753 = vrot.lane.b32.xlu0 %v743_v30, %s1661_s28 }
 0x103   :  { %1513 = vset.pattern.permute.xlu1 %v1664_v31  ;;  %v1558_v31 = vld [vmem:[%s2464_s3] sm:$0xff]  ;;  %s1679_s3 = smov 81  }
 0x104   :  { %887 = vperm.xlu1 %1513, %v1734_v0  }
 0x106   :  { %757 = vrot.lane.b32.xlu0 %v745_v32, %s1661_s28 }
 0x108   :  { %1514 = vset.pattern.permute.xlu1 %v1665_v34  ;;  %v1673_v34 = vmov 15  }
 0x109   :  { %924 = vperm.xlu1 %1514, %v1734_v0  }
 0x10a   :  { %761 = vrot.lane.b32.xlu0 %v747_v53, %s1661_s28 }
 0x10d   :  { %1516 = vset.pattern.permute.xlu1 %v1666_v35 }
 0x10e   :  { %998 = vperm.xlu1 %1516, %v1734_v0  }
 0x112   :  { %1517 = vset.pattern.permute.xlu1 %v1667_v28 }
 0x113   :  { %1035 = vperm.xlu1 %1517, %v1734_v0  }
 0x117   :  { %1519 = vset.pattern.permute.xlu1 %v1668_v36  ;;  %v1675_v36 = vmov 18  }
 0x118   :  { %1109 = vperm.xlu1 %1519, %v1734_v0  }
 0x11c   :  { %v2009_v37 = vpop.permute.xlu1 %457  ;;  %v2011_v38 = vpop.permute.xlu0 %459  ;;  %1520 = vset.pattern.permute.xlu1 %v1669_v40  ;;  %v1676_v40 = vmov 21  }
 0x11d   :  { %1146 = vperm.xlu1 %1520, %v1734_v0  }
 0x120   :  { %v2014_v41 = vpop.permute.xlu1 %461  ;;  %v2016_v42 = vpop.permute.xlu0 %463 }
 0x121   :  { %1522 = vset.pattern.permute.xlu1 %v1670_v43  ;;  %v1677_v43 = vmov 24  }
 0x122   :  { %1220 = vperm.xlu1 %1522, %v1734_v0  }
 0x124   :  { %v2019_v44 = vpop.permute.xlu1 %465  ;;  %v2021_v45 = vpop.permute.xlu0 %498 }
 0x126   :  { %1523 = vset.pattern.permute.xlu1 %v1671_v46  ;;  %v1678_v46 = vmov 0  }
 0x127   :  { %1257 = vperm.xlu1 %1523, %v1734_v0  }
 0x128   :  { %v2024_v47 = vpop.permute.xlu1 %494  ;;  %v2026_v48 = vpop.permute.xlu0 %502 }
 0x12c   :  { %v2028_v49 = vpop.permute.xlu1 %496  ;;  %v2030_v59 = vpop.permute.xlu0 %531 }
 0x130   :  { %v2032_v50 = vpop.permute.xlu1 %500  ;;  %v2034_v51 = vpop.permute.xlu0 %535 }
 0x134   :  { %v2036_v52 = vpop.permute.xlu1 %533  ;;  %v2038_v54 = vpop.permute.xlu0 %539 }
 0x138   :  { %v2040_v55 = vpop.permute.xlu1 %537  ;;  %v2042_v56 = vpop.permute.xlu0 %568 }
 0x13c   :  { %v2044_v0 = vpop.permute.xlu1 %570  ;;  %v2046_v57 = vpop.permute.xlu0 %572 }
 0x140   :  { %v2048_v58 = vpop.permute.xlu1 %574  ;;  %v2050_v39 = vpop.permute.xlu0 %576 }
 0x144   :  { %v2052_v60 = vpop.permute.xlu1 %607  ;;  %v2054_v61 = vpop.permute.xlu0 %605 }
 0x148   :  { %v2056_v62 = vpop.permute.xlu1 %611  ;;  %v2058_v63 = vpop.permute.xlu0 %609 }
 0x14c   :  { %v2060_v1 = vpop.permute.xlu1 %644  ;;  %v2062_v2 = vpop.permute.xlu0 %613 }
 0x150   :  { %v2064_v3 = vpop.permute.xlu1 %648  ;;  %v2066_v5 = vpop.permute.xlu0 %642 }
 0x154   :  { %v2068_v4 = vpop.permute.xlu1 %681  ;;  %v2070_v6 = vpop.permute.xlu0 %646 }
 0x158   :  { %v2072_v7 = vpop.permute.xlu0 %650  ;;  %v2074_v8 = vpop.permute.xlu1 %685 }
 0x15c   :  { %v2076_v9 = vpop.permute.xlu0 %679  ;;  %v2078_v10 = vpop.permute.xlu1 %718 }
 0x160   :  { %v2080_v11 = vpop.permute.xlu0 %683  ;;  %v2084_v15 = vpop.permute.xlu1 %722 }
 0x164   :  { %v2082_v14 = vpop.permute.xlu0 %687  ;;  %v2088_v18 = vpop.permute.xlu1 %755 }
 0x168   :  { %v2086_v33 = vpop.permute.xlu0 %716  ;;  %v2094_v23 = vpop.permute.xlu1 %759 }
 0x16c   :  { %v2090_v19 = vpop.permute.xlu0 %720 }
 0x170   :  { %v2092_v20 = vpop.permute.xlu0 %724 }
 0x174   :  { %v2096_v24 = vpop.permute.xlu0 %753 }
 0x175   :  { %v778_v25 = vpop.permute.xlu1 %777 }
 0x176   :  { %v781_v22 = vmul.f32 %v778_v25, %v1912_v13  ;;  %v780_v26 = vmul.f32 %v778_v25, %v1910_v12  ;;  %v782_v30 = vmul.f32 %v778_v25, %v1916_v16  ;;  %v784_v32 = vmul.f32 %v778_v25, %v1922_v21 }
 0x178   :  { %792 = vrot.lane.b32.xlu1 %v781_v22, %s1672_s1  ;;  %790 = vrot.lane.b32.xlu0 %v780_v26, %s1672_s1  ;;  %v2102_v27 = vpop.permute.xlu0 %757  ;;  %v783_v22 = vmul.f32 %v778_v25, %v1918_v17 }
 0x179   :  { %v2107_v29 = vsel %vm763_vm4, %v2102_v27, %v2094_v23 }
 0x17a   :  { %2497 = vst [vmem:[#allocation15_spill] sm:$0xff] %v2107_v29  ;;  %v815_v53 = vpop.permute.xlu1 %814 }
 0x17b   :  { %v818_v35 = vmul.f32 %v815_v53, %v1912_v13  ;;  %v820_v28 = vmul.f32 %v815_v53, %v1918_v17  ;;  %v817_v26 = vmul.f32 %v815_v53, %v1910_v12 }
 0x17c   :  { %794 = vrot.lane.b32.xlu1 %v782_v30, %s1672_s1  ;;  %851 = vperm.xlu0 %1512, %v1558_v31   ;;  %v819_v30 = vmul.f32 %v815_v53, %v1916_v16 }
 0x180   :  { %798 = vrot.lane.b32.xlu1 %v784_v32, %s1672_s1  ;;  %1515 = vset.pattern.permute.xlu0 %v1673_v34  ;;  %v821_v32 = vmul.f32 %v815_v53, %v1922_v21  ;;  %v888_v34 = vpop.permute.xlu1 %887 }
 0x181   :  { %961 = vperm.xlu0 %1515, %v1558_v31  }
 0x184   :  { %829 = vrot.lane.b32.xlu1 %v818_v35, %s1674_s6  ;;  %v2123_v35 = vpop.permute.xlu1 %924 }
 0x185   :  { %1518 = vset.pattern.permute.xlu0 %v1675_v36 }
 0x186   :  { %1072 = vperm.xlu0 %1518, %v1558_v31  }
 0x188   :  { %833 = vrot.lane.b32.xlu1 %v820_v28, %s1674_s6 }
 0x189   :  { %v2125_v28 = vpop.permute.xlu1 %998 }
 0x18a   :  { %1521 = vset.pattern.permute.xlu0 %v1676_v40 }
 0x18b   :  { %1183 = vperm.xlu0 %1521, %v1558_v31  }
 0x18e   :  { %v2127_v36 = vpop.permute.xlu1 %1035 }
 0x18f   :  { %1524 = vset.pattern.permute.xlu0 %v1677_v43  ;;  %2498 = vst [vmem:[#allocation16_spill] sm:$0xff] %v2127_v36 }
 0x190   :  { %1294 = vperm.xlu0 %1524, %v1558_v31  }
 0x194   :  { %1525 = vset.pattern.permute.xlu0 %v1678_v46  ;;  %v2137_v46 = vpop.permute.xlu0 %761 }
 0x195   :  { %432 = vperm.xlu0 %1525, %v1558_v31   ;;  %v2129_v31 = vpop.permute.xlu1 %1109 }
 0x196   :  { %2499 = vst [vmem:[#allocation17_spill] sm:$0xff] %v2129_v31 }
 0x199   :  { %796 = vrot.lane.b32.xlu0 %v783_v22, %s1672_s1  ;;  %v2131_v25 = vpop.permute.xlu1 %1146 }
 0x19a   :  { %2500 = vst [vmem:[#allocation18_spill] sm:$0xff] %v2131_v25 }
 0x19d   :  { %827 = vrot.lane.b32.xlu0 %v817_v26, %s1674_s6  ;;  %v2133_v40 = vpop.permute.xlu1 %1220 }
 0x19e   :  { %2501 = vst [vmem:[#allocation19_spill] sm:$0xff] %v2133_v40 }
 0x1a1   :  { %831 = vrot.lane.b32.xlu0 %v819_v30, %s1674_s6 }
 0x1a2   :  { %v2135_v43 = vpop.permute.xlu1 %1257 }
 0x1a3   :  { %2502 = vst [vmem:[#allocation20_spill] sm:$0xff] %v2135_v43 }
 0x1a5   :  { %835 = vrot.lane.b32.xlu0 %v821_v32, %s1674_s6 }
 0x1ea   :  { %v793_v53 = vpop.permute.xlu1 %792  ;;  %v791_v22 = vpop.permute.xlu0 %790 }
 0x1eb   :  { %v2140_v26 = vsel %vm800_vm5, %v791_v22, %v793_v53 }
 0x1ec   :  { %2503 = vst [vmem:[#allocation21_spill] sm:$0xff] %v2140_v26 }
 0x1ee   :  { %v2142_v30 = vpop.permute.xlu1 %794 }
 0x1ef   :  { %v2146_v32 = vsel %vm800_vm5, %v793_v53, %v2142_v30  ;;  %v890_v53 = vmul.f32 %v888_v34, %v1910_v12 }
 0x1f0   :  { %2504 = vst [vmem:[#allocation22_spill] sm:$0xff] %v2146_v32 }
 0x1f7   :  { %v852_v31 = vpop.permute.xlu0 %851 }
 0x1f8   :  { %v855_v25 = vmul.f32 %v852_v31, %v1912_v13  ;;  %v854_v40 = vmul.f32 %v852_v31, %v1910_v12  ;;  %v857_v43 = vmul.f32 %v852_v31, %v1918_v17  ;;  %v856_v22 = vmul.f32 %v852_v31, %v1916_v16 }
 0x1f9   :  { %v858_v32 = vmul.f32 %v852_v31, %v1922_v21  ;;  %v928_v31 = vmul.f32 %v2123_v35, %v1912_v13 }
 0x1fa   :  { %866 = vrot.lane.b32.xlu0 %v855_v25, %s1651_s19  ;;  %864 = vrot.lane.b32.xlu1 %v854_v40, %s1651_s19  ;;  %v892_v25 = vmul.f32 %v888_v34, %v1916_v16  ;;  %v891_v40 = vmul.f32 %v888_v34, %v1912_v13 }
 0x1fc   :  { %v2154_v36 = vpop.permute.xlu0 %961 }
 0x1fe   :  { %870 = vrot.lane.b32.xlu0 %v857_v43, %s1651_s19  ;;  %868 = vrot.lane.b32.xlu1 %v856_v22, %s1651_s19  ;;  %v894_v43 = vmul.f32 %v888_v34, %v1922_v21  ;;  %v893_v22 = vmul.f32 %v888_v34, %v1918_v17  ;;  %v469_v34 = vsel %vm467_vm6, %v2011_v38, %v2014_v41 }
 0x201   :  { %v2160_v26 = vpop.permute.xlu0 %1072 }
 0x202   :  { %2505 = vst [vmem:[#allocation23_spill] sm:$0xff] %v2160_v26  ;;  %900 = vrot.lane.b32.xlu0 %v890_v53, %s1679_s3  ;;  %872 = vrot.lane.b32.xlu1 %v858_v32, %s1651_s19  ;;  %v927_v32 = vmul.f32 %v2123_v35, %v1910_v12  ;;  %v931_v26 = vmul.f32 %v2123_v35, %v1922_v21 }
 0x206   :  { %904 = vrot.lane.b32.xlu0 %v892_v25, %s1679_s3  ;;  %902 = vrot.lane.b32.xlu1 %v891_v40, %s1679_s3  ;;  %v2165_v29 = vpop.permute.xlu0 %1183  ;;  %v468_v25 = vsel %vm467_vm6, %v2009_v37, %v2011_v38  ;;  %v470_v40 = vsel %vm467_vm6, %v2014_v41, %v2016_v42  ;;  %v507_v37 = vsel %vm504_vm7, %v2021_v45, %v2032_v50 }
 0x207   :  { %2506 = vst [vmem:[#allocation24_spill] sm:$0xff] %v2165_v29  ;;  %v508_v38 = vsel %vm504_vm7, %v2032_v50, %v2026_v48  ;;  %v542_v41 = vsel %vm541_vm8, %v2030_v59, %v2036_v52  ;;  %v580_v48 = vsel %vm578_vm9, %v2044_v0, %v2046_v57  ;;  %v582_v59 = vsel %vm578_vm9, %v2048_v58, %v2050_v39 }
 0x208   :  { %v964_v39 = vmul.f32 %v2154_v36, %v1910_v12 }
 0x20a   :  { %908 = vrot.lane.b32.xlu0 %v894_v43, %s1679_s3  ;;  %906 = vrot.lane.b32.xlu1 %v893_v22, %s1679_s3  ;;  %v471_v43 = vsel %vm467_vm6, %v2016_v42, %v2019_v44  ;;  %v505_v22 = vsel %vm504_vm7, %v2024_v47, %v2028_v49  ;;  %v543_v42 = vsel %vm541_vm8, %v2036_v52, %v2034_v51  ;;  %vm1169_vm6 = vcmask 326656  }
 0x20b   :  { %v2173_v53 = vpop.permute.xlu0 %1294  ;;  %v544_v44 = vsel %vm541_vm8, %v2034_v51, %v2040_v55  ;;  %v579_v47 = vsel %vm578_vm9, %v2042_v56, %v2044_v0  ;;  %v930_v51 = vmul.f32 %v2123_v35, %v1918_v17  ;;  %v929_v52 = vmul.f32 %v2123_v35, %v1916_v16 }
 0x20c   :  { %2507 = vst [vmem:[#allocation25_spill] sm:$0xff] %v2173_v53  ;;  %v506_v53 = vsel %vm504_vm7, %v2028_v49, %v2021_v45  ;;  %v545_v45 = vsel %vm541_vm8, %v2040_v55, %v2038_v54  ;;  %v581_v49 = vsel %vm578_vm9, %v2046_v57, %v2048_v58  ;;  %v616_v57 = vsel %vm615_vm10, %v2054_v61, %v2052_v60 }
 0x20d   :  { %v617_v58 = vsel %vm615_vm10, %v2052_v60, %v2058_v63  ;;  %v618_v61 = vsel %vm615_vm10, %v2058_v63, %v2056_v62  ;;  %v619_v60 = vsel %vm615_vm10, %v2056_v62, %v2062_v2  ;;  %v654_v63 = vsel %vm652_vm11, %v2060_v1, %v2070_v6 }
 0x20e   :  { %939 = vrot.lane.b32.xlu0 %v928_v31, %s1680_s7  ;;  %937 = vrot.lane.b32.xlu1 %v927_v32, %s1680_s7  ;;  %vm1206_vm7 = vcmask 318464   ;;  %vm1243_vm8 = vcmask 310272   ;;  %vm1280_vm9 = vcmask 302080   ;;  %vm1317_vm10 = vcmask 293888  }
 0x210   :  { %v433_v50 = vpop.permute.xlu0 %432 }
 0x211   :  { %v435_v54 = vmul.f32 %v433_v50, %v1910_v12  ;;  %v436_v55 = vmul.f32 %v433_v50, %v1912_v13  ;;  %v437_v56 = vmul.f32 %v433_v50, %v1916_v16  ;;  %v438_v0 = vmul.f32 %v433_v50, %v1918_v17 }
 0x212   :  { %943 = vrot.lane.b32.xlu0 %v930_v51, %s1680_s7  ;;  %941 = vrot.lane.b32.xlu1 %v929_v52, %s1680_s7  ;;  %v653_v51 = vsel %vm652_vm11, %v2066_v5, %v2060_v1  ;;  %v655_v1 = vsel %vm652_vm11, %v2070_v6, %v2064_v3  ;;  %v690_v6 = vsel %vm689_vm13, %v2076_v9, %v2068_v4 }
 0x213   :  { %v476_v31 = vadd.f32 %v468_v25, %v435_v54  ;;  %v477_v32 = vadd.f32 %v469_v34, %v436_v55  ;;  %v478_v29 = vadd.f32 %v470_v40, %v437_v56  ;;  %v479_v50 = vadd.f32 %v471_v43, %v438_v0  ;;  %v799_v25 = vpop.permute.xlu1 %798 }
 0x214   :  { %v797_v52 = vpop.permute.xlu0 %796  ;;  %v692_v55 = vsel %vm689_vm13, %v2080_v11, %v2074_v8  ;;  %v693_v9 = vsel %vm689_vm13, %v2074_v8, %v2082_v14  ;;  %v968_v56 = vmul.f32 %v2154_v36, %v1922_v21  ;;  %v1001_v8 = vmul.f32 %v2125_v28, %v1910_v12 }
 0x215   :  { %v513_v34 = vadd.f32 %v505_v22, %v476_v31  ;;  %v514_v40 = vadd.f32 %v506_v53, %v477_v32  ;;  %v515_v43 = vadd.f32 %v507_v37, %v478_v29  ;;  %v516_v54 = vadd.f32 %v508_v38, %v479_v50 }
 0x216   :  { %v2255_v62 = vsel %vm800_vm5, %v2142_v30, %v797_v52  ;;  %v2258_v2 = vsel %vm800_vm5, %v797_v52, %v799_v25  ;;  %945 = vrot.lane.b32.xlu1 %v931_v26, %s1680_s7  ;;  %974 = vrot.lane.b32.xlu0 %v964_v39, %s1681_s0  ;;  %v656_v30 = vsel %vm652_vm11, %v2064_v3, %v2072_v7  ;;  %vm1132_vm5 = vcmask 474112  }
 0x217   :  { %v550_v5 = vadd.f32 %v542_v41, %v513_v34  ;;  %v551_v29 = vadd.f32 %v543_v42, %v514_v40  ;;  %v552_v35 = vadd.f32 %v544_v44, %v515_v43  ;;  %v553_v53 = vadd.f32 %v545_v45, %v516_v54  ;;  %v830_v45 = vpop.permute.xlu1 %829 }
 0x218   :  { %v965_v22 = vmul.f32 %v2154_v36, %v1912_v13  ;;  %v966_v26 = vmul.f32 %v2154_v36, %v1916_v16  ;;  %v828_v37 = vpop.permute.xlu0 %827  ;;  %v691_v3 = vsel %vm689_vm13, %v2068_v4, %v2080_v11  ;;  %v967_v4 = vmul.f32 %v2154_v36, %v1918_v17 }
 0x219   :  { %v587_v38 = vadd.f32 %v579_v47, %v550_v5  ;;  %v588_v41 = vadd.f32 %v580_v48, %v551_v29  ;;  %v589_v42 = vadd.f32 %v581_v49, %v552_v35  ;;  %v590_v44 = vadd.f32 %v582_v59, %v553_v53 }
 0x21a   :  { %976 = vrot.lane.b32.xlu1 %v965_v22, %s1681_s0  ;;  %978 = vrot.lane.b32.xlu0 %v966_v26, %s1681_s0  ;;  %v838_v7 = vsel %vm837_vm12, %v828_v37, %v830_v45  ;;  %v1002_v14 = vmul.f32 %v2125_v28, %v1912_v13  ;;  %v729_v52 = vsel %vm726_vm14, %v2090_v19, %v2084_v15  ;;  %v2511_v26 = vld [vmem:[#allocation16_spill] sm:$0xff] }
 0x21b   :  { %v626_v47 = vadd.f32 %v618_v61, %v589_v42  ;;  %v627_v48 = vadd.f32 %v619_v60, %v590_v44  ;;  %v624_v49 = vadd.f32 %v616_v57, %v587_v38  ;;  %v625_v59 = vadd.f32 %v617_v58, %v588_v41 }
 0x21c   :  { %v832_v57 = vpop.permute.xlu0 %831  ;;  %v727_v60 = vsel %vm726_vm14, %v2086_v33, %v2078_v10  ;;  %v730_v25 = vsel %vm726_vm14, %v2084_v15, %v2092_v20  ;;  %v764_v33 = vsel %vm763_vm4, %v2096_v24, %v2088_v18  ;;  %v2508_v15 = vld [vmem:[#allocation15_spill] sm:$0xff]  ;;  %v1003_v24 = vmul.f32 %v2125_v28, %v1916_v16 }
 0x21d   :  { %v663_v0 = vadd.f32 %v655_v1, %v626_v47  ;;  %v664_v39 = vadd.f32 %v656_v30, %v627_v48  ;;  %v661_v31 = vadd.f32 %v653_v51, %v624_v49  ;;  %v662_v32 = vadd.f32 %v654_v63, %v625_v59  ;;  %v2310_v63 = vpop.permute.xlu1 %833  ;;  %v2510_v30 = vld [vmem:[#allocation22_spill] sm:$0xff]  ;;  %v2513_v49 = vld [vmem:[#allocation17_spill] sm:$0xff] }
 0x21e   :  { %980 = vrot.lane.b32.xlu1 %v967_v4, %s1681_s0  ;;  %982 = vrot.lane.b32.xlu0 %v968_v56, %s1681_s0  ;;  %v839_v11 = vsel %vm837_vm12, %v830_v45, %v832_v57  ;;  %v728_v51 = vsel %vm726_vm14, %v2078_v10, %v2090_v19  ;;  %v765_v10 = vsel %vm763_vm4, %v2088_v18, %v2102_v27 }
 0x21f   :  { %v700_v58 = vadd.f32 %v692_v55, %v663_v0  ;;  %v701_v50 = vadd.f32 %v693_v9, %v664_v39  ;;  %v698_v36 = vadd.f32 %v690_v6, %v661_v31  ;;  %v699_v61 = vadd.f32 %v691_v3, %v662_v32  ;;  %v2514_v39 = vld [vmem:[#allocation18_spill] sm:$0xff] }
 0x220   :  { %v767_v19 = vsel %vm763_vm4, %v2094_v23, %v2137_v46  ;;  %v840_v53 = vsel %vm837_vm12, %v832_v57, %v2310_v63  ;;  %v1004_v18 = vmul.f32 %v2125_v28, %v1918_v17  ;;  %v2509_v46 = vld [vmem:[#allocation21_spill] sm:$0xff]  ;;  %v1038_v37 = vmul.f32 %v2511_v26, %v1910_v12 }
 0x221   :  { %v737_v34 = vadd.f32 %v729_v52, %v700_v58  ;;  %v738_v40 = vadd.f32 %v730_v25, %v701_v50  ;;  %v735_v43 = vadd.f32 %v727_v60, %v698_v36  ;;  %v736_v54 = vadd.f32 %v728_v51, %v699_v61  ;;  %v2516_v51 = vld [vmem:[#allocation19_spill] sm:$0xff] }
 0x222   :  { %1011 = vrot.lane.b32.xlu1 %v1001_v8, %s1682_s8  ;;  %1013 = vrot.lane.b32.xlu0 %v1002_v14, %s1682_s8  ;;  %v1040_v44 = vmul.f32 %v2511_v26, %v1916_v16  ;;  %v1041_v45 = vmul.f32 %v2511_v26, %v1918_v17  ;;  %v1042_v6 = vmul.f32 %v2511_v26, %v1922_v21  ;;  %v2515_v8 = vld [vmem:[#allocation24_spill] sm:$0xff]  ;;  %vm1095_vm4 = vcmask 482304  }
 0x223   :  { %v774_v20 = vadd.f32 %v2508_v15, %v737_v34  ;;  %v775_v5 = vadd.f32 %v767_v19, %v738_v40  ;;  %v772_v29 = vadd.f32 %v764_v33, %v735_v43  ;;  %v773_v35 = vadd.f32 %v765_v10, %v736_v54  ;;  %v2517_v54 = vld [vmem:[#allocation20_spill] sm:$0xff]  ;;  %v836_v10 = vpop.permute.xlu0 %835 }
 0x224   :  { %v1112_v59 = vmul.f32 %v2513_v49, %v1910_v12  ;;  %v1114_v9 = vmul.f32 %v2513_v49, %v1916_v16  ;;  %v1113_v4 = vmul.f32 %v2513_v49, %v1912_v13  ;;  %v1116_v56 = vmul.f32 %v2513_v49, %v1922_v21 }
 0x225   :  { %v811_v27 = vadd.f32 %v2255_v62, %v774_v20  ;;  %v2330_v23 = vadd.f32 %v2258_v2, %v775_v5  ;;  %v809_v1 = vadd.f32 %v2509_v46, %v772_v29  ;;  %v810_v22 = vadd.f32 %v2510_v30, %v773_v35  ;;  %v1560_v46 = vld [vmem:[#allocation2 + $0x8] sm:$0xff] }
 0x226   :  { %1015 = vrot.lane.b32.xlu1 %v1003_v24, %s1682_s8  ;;  %1017 = vrot.lane.b32.xlu0 %v1004_v18, %s1682_s8  ;;  %v1005_v62 = vmul.f32 %v2125_v28, %v1922_v21  ;;  %v1039_v2 = vmul.f32 %v2511_v26, %v1912_v13  ;;  %v2512_v28 = vld [vmem:[#allocation23_spill] sm:$0xff]  ;;  %v1115_v0 = vmul.f32 %v2513_v49, %v1918_v17  ;;  %v1559_v18 = vld [vmem:[#allocation2] sm:$0xff] }
 0x227   :  { %v2336_v38 = vadd.f32 %v838_v7, %v809_v1  ;;  %v2338_v41 = vadd.f32 %v839_v11, %v810_v22  ;;  %v2340_v42 = vadd.f32 %v840_v53, %v811_v27  ;;  %v1076_v3 = vmul.f32 %v2512_v28, %v1912_v13 }
 0x228   :  { %v1075_v7 = vmul.f32 %v2512_v28, %v1910_v12  ;;  %v1078_v47 = vmul.f32 %v2512_v28, %v1918_v17  ;;  %v1077_v48 = vmul.f32 %v2512_v28, %v1916_v16  ;;  %v1079_v55 = vmul.f32 %v2512_v28, %v1922_v21 }
 0x229   :  { %v1150_v31 = vmul.f32 %v2514_v39, %v1912_v13  ;;  %v1149_v32 = vmul.f32 %v2514_v39, %v1910_v12  ;;  %v1152_v57 = vmul.f32 %v2514_v39, %v1918_v17  ;;  %v1151_v11 = vmul.f32 %v2514_v39, %v1916_v16 }
 0x22a   :  { %1019 = vrot.lane.b32.xlu1 %v1005_v62, %s1682_s8  ;;  %1048 = vrot.lane.b32.xlu0 %v1038_v37, %s1683_s9  ;;  %v1186_v14 = vmul.f32 %v2515_v8, %v1910_v12  ;;  %v1153_v58 = vmul.f32 %v2514_v39, %v1922_v21  ;;  %v1187_v50 = vmul.f32 %v2515_v8, %v1912_v13 }
 0x22b   :  { %v1188_v36 = vmul.f32 %v2515_v8, %v1916_v16  ;;  %v1189_v61 = vmul.f32 %v2515_v8, %v1918_v17  ;;  %v1190_v60 = vmul.f32 %v2515_v8, %v1922_v21  ;;  %v1223_v52 = vmul.f32 %v2516_v51, %v1910_v12 }
 0x22c   :  { %v1224_v25 = vmul.f32 %v2516_v51, %v1912_v13  ;;  %v1225_v34 = vmul.f32 %v2516_v51, %v1916_v16  ;;  %v1226_v40 = vmul.f32 %v2516_v51, %v1918_v17  ;;  %v1227_v43 = vmul.f32 %v2516_v51, %v1922_v21 }
 0x22d   :  { %v1260_v33 = vmul.f32 %v2517_v54, %v1910_v12  ;;  %v1261_v19 = vmul.f32 %v2517_v54, %v1912_v13  ;;  %v1262_v15 = vmul.f32 %v2517_v54, %v1916_v16  ;;  %v1263_v29 = vmul.f32 %v2517_v54, %v1918_v17  ;;  %v2518_v16 = vld [vmem:[#allocation25_spill] sm:$0xff] }
 0x22e   :  { %1050 = vrot.lane.b32.xlu1 %v1039_v2, %s1683_s9  ;;  %1052 = vrot.lane.b32.xlu0 %v1040_v44, %s1683_s9  ;;  %v1264_v12 = vmul.f32 %v2517_v54, %v1922_v21  ;;  %v1298_v27 = vmul.f32 %v1559_v18, %v2518_v16  ;;  %v1297_v1 = vmul.f32 %v1560_v46, %v2518_v16  ;;  %v1561_v2 = vld [vmem:[#allocation2 + $0x10] sm:$0xff] }
 0x22f   :  { %v841_v17 = vsel %vm837_vm12, %v2310_v63, %v836_v10  ;;  %v1300_v44 = vmul.f32 %v1561_v2, %v2518_v16 }
 0x230   :  { %v849_v37 = vadd.f32 %v841_v17, %v2330_v23 }
 0x232   :  { %1054 = vrot.lane.b32.xlu1 %v1041_v45, %s1683_s9  ;;  %1056 = vrot.lane.b32.xlu0 %v1042_v6, %s1683_s9  ;;  %v1562_v45 = vld [vmem:[#allocation2 + $0x20] sm:$0xff] }
 0x233   :  { %v1299_v63 = vmul.f32 %v1562_v45, %v2518_v16 }
 0x236   :  { %1087 = vrot.lane.b32.xlu0 %v1076_v3, %s1684_s2  ;;  %1085 = vrot.lane.b32.xlu1 %v1075_v7, %s1684_s2  ;;  %v1563_v3 = vld [vmem:[#allocation2 + $0x18] sm:$0xff] }
 0x237   :  { %v1301_v7 = vmul.f32 %v1563_v3, %v2518_v16 }
 0x23a   :  { %1091 = vrot.lane.b32.xlu0 %v1078_v47, %s1684_s2  ;;  %1089 = vrot.lane.b32.xlu1 %v1077_v48, %s1684_s2 }
 0x23e   :  { %1122 = vrot.lane.b32.xlu0 %v1112_v59, %s1685_s10  ;;  %1093 = vrot.lane.b32.xlu1 %v1079_v55, %s1684_s2 }
 0x242   :  { %1126 = vrot.lane.b32.xlu0 %v1114_v9, %s1685_s10  ;;  %1124 = vrot.lane.b32.xlu1 %v1113_v4, %s1685_s10 }
 0x246   :  { %1130 = vrot.lane.b32.xlu0 %v1116_v56, %s1685_s10  ;;  %1128 = vrot.lane.b32.xlu1 %v1115_v0, %s1685_s10 }
 0x24a   :  { %1161 = vrot.lane.b32.xlu0 %v1150_v31, %s1686_s11  ;;  %1159 = vrot.lane.b32.xlu1 %v1149_v32, %s1686_s11 }
 0x24e   :  { %1165 = vrot.lane.b32.xlu0 %v1152_v57, %s1686_s11  ;;  %1163 = vrot.lane.b32.xlu1 %v1151_v11, %s1686_s11 }
 0x252   :  { %1167 = vrot.lane.b32.xlu1 %v1153_v58, %s1686_s11  ;;  %1196 = vrot.lane.b32.xlu0 %v1186_v14, %s1687_s12 }
 0x256   :  { %1198 = vrot.lane.b32.xlu1 %v1187_v50, %s1687_s12  ;;  %1200 = vrot.lane.b32.xlu0 %v1188_v36, %s1687_s12 }
 0x25a   :  { %1202 = vrot.lane.b32.xlu1 %v1189_v61, %s1687_s12  ;;  %1204 = vrot.lane.b32.xlu0 %v1190_v60, %s1687_s12 }
 0x25e   :  { %1233 = vrot.lane.b32.xlu1 %v1223_v52, %s1688_s13  ;;  %1235 = vrot.lane.b32.xlu0 %v1224_v25, %s1688_s13 }
 0x262   :  { %1237 = vrot.lane.b32.xlu1 %v1225_v34, %s1688_s13  ;;  %1239 = vrot.lane.b32.xlu0 %v1226_v40, %s1688_s13 }
 0x266   :  { %1241 = vrot.lane.b32.xlu1 %v1227_v43, %s1688_s13  ;;  %1270 = vrot.lane.b32.xlu0 %v1260_v33, %s1689_s14 }
 0x26a   :  { %1272 = vrot.lane.b32.xlu1 %v1261_v19, %s1689_s14  ;;  %1274 = vrot.lane.b32.xlu0 %v1262_v15, %s1689_s14 }
 0x26c   :  { %v865_v20 = vpop.permute.xlu1 %864  ;;  %v867_v5 = vpop.permute.xlu0 %866 }
 0x26d   :  { %v874_v35 = vsel %vm234_vm1, %v865_v20, %v867_v5 }
 0x26e   :  { %v882_v53 = vadd.f32 %v874_v35, %v2336_v38  ;;  %1276 = vrot.lane.b32.xlu1 %v1263_v29, %s1689_s14  ;;  %1278 = vrot.lane.b32.xlu0 %v1264_v12, %s1689_s14 }
 0x270   :  { %v869_v13 = vpop.permute.xlu1 %868  ;;  %v871_v24 = vpop.permute.xlu0 %870 }
 0x271   :  { %v875_v30 = vsel %vm234_vm1, %v867_v5, %v869_v13  ;;  %v876_v21 = vsel %vm234_vm1, %v869_v13, %v871_v24 }
 0x272   :  { %v883_v22 = vadd.f32 %v875_v30, %v2338_v41  ;;  %v884_v26 = vadd.f32 %v876_v21, %v2340_v42  ;;  %1309 = vrot.lane.b32.xlu0 %v1298_v27, %s1690_s15  ;;  %1307 = vrot.lane.b32.xlu1 %v1297_v1, %s1690_s15  ;;  %v1346_v41 = vld [vmem:[%s2465_s4] sm:$0xf]  ;;  %s1691_s4 = smov [#allocation10]  }
 0x273   :  { %s1426_s18 = sshll.u32 %s1691_s4, 4  ;;  %s1427_s18 = int_to_ptr.vmem [resolvable:$true] %s1426_s18 }
 0x274   :  { %v873_v38 = vpop.permute.xlu1 %872  ;;  %v901_v62 = vpop.permute.xlu0 %900  ;;  %s1608_s19 = scalar_lea.vmem %s1427_s18, 512  ;;  %p1613_p2 = scmp.lt.s32.totalorder %s1427_s18, %s1427_s18 }
 0x275   :  { %v877_v6 = vsel %vm234_vm1, %v871_v24, %v873_v38  ;;  %vm1058_vm1 = vcmask 490496   ;;  %p1609_p1 = scmp.ne.s32.totalorder %s1427_s18, %s1608_s19  ;;  %p1614_p3 = scmp.lt.s32.totalorder %s1608_s19, %s1608_s19 }
 0x276   :  { %v885_v28 = vadd.f32 %v877_v6, %v849_v37  ;;  %1313 = vrot.lane.b32.xlu0 %v1300_v44, %s1690_s15  ;;  %1311 = vrot.lane.b32.xlu1 %v1299_v63, %s1690_s15 }
 0x277   :  { %p1615_p4 = por %p1614_p3, %p1613_p2 }
 0x278   :  { %v903_v42 = vpop.permute.xlu1 %902  ;;  %v905_v23 = vpop.permute.xlu0 %904 }
 0x279   :  { %v911_v47 = vsel %vm910_vm15, %v901_v62, %v903_v42  ;;  %v912_v48 = vsel %vm910_vm15, %v903_v42, %v905_v23  ;;  %p1616_p5 = pnand %p1615_p4, %p1609_p1 }
 0x27a   :  { %v919_v49 = vadd.f32 %v911_v47, %v882_v53  ;;  %v920_v59 = vadd.f32 %v912_v48, %v883_v22  ;;  %1349 = vperm.xlu0 %1525, %v1346_v41   ;;  %1315 = vrot.lane.b32.xlu1 %v1301_v7, %s1690_s15 }
 0x27c   :  { %v907_v55 = vpop.permute.xlu1 %906  ;;  %v909_v9 = vpop.permute.xlu0 %908 }
 0x27d   :  { %v913_v4 = vsel %vm910_vm15, %v905_v23, %v907_v55  ;;  %v914_v56 = vsel %vm910_vm15, %v907_v55, %v909_v9 }
 0x27e   :  { %v921_v0 = vadd.f32 %v913_v4, %v884_v26  ;;  %v922_v39 = vadd.f32 %v914_v56, %v885_v28 }
 0x280   :  { %v938_v31 = vpop.permute.xlu1 %937  ;;  %v940_v32 = vpop.permute.xlu0 %939 }
 0x281   :  { %v948_v57 = vsel %vm947_vm0, %v938_v31, %v940_v32 }
 0x282   :  { %v956_v11 = vadd.f32 %v948_v57, %v919_v49 }
 0x284   :  { %v942_v8 = vpop.permute.xlu1 %941  ;;  %v944_v14 = vpop.permute.xlu0 %943 }
 0x285   :  { %v949_v58 = vsel %vm947_vm0, %v940_v32, %v942_v8  ;;  %v950_v50 = vsel %vm947_vm0, %v942_v8, %v944_v14 }
 0x286   :  { %v957_v36 = vadd.f32 %v949_v58, %v920_v59  ;;  %v958_v61 = vadd.f32 %v950_v50, %v921_v0 }
 0x288   :  { %v946_v60 = vpop.permute.xlu1 %945  ;;  %v975_v51 = vpop.permute.xlu0 %974 }
 0x289   :  { %v951_v52 = vsel %vm947_vm0, %v944_v14, %v946_v60 }
 0x28a   :  { %v959_v25 = vadd.f32 %v951_v52, %v922_v39 }
 0x28c   :  { %v977_v34 = vpop.permute.xlu1 %976  ;;  %v979_v40 = vpop.permute.xlu0 %978 }
 0x28d   :  { %v985_v43 = vsel %vm984_vm2, %v975_v51, %v977_v34  ;;  %v986_v54 = vsel %vm984_vm2, %v977_v34, %v979_v40 }
 0x28e   :  { %v993_v33 = vadd.f32 %v985_v43, %v956_v11  ;;  %v994_v10 = vadd.f32 %v986_v54, %v957_v36 }
 0x290   :  { %v981_v19 = vpop.permute.xlu1 %980  ;;  %v983_v15 = vpop.permute.xlu0 %982 }
 0x291   :  { %v987_v20 = vsel %vm984_vm2, %v979_v40, %v981_v19  ;;  %v988_v5 = vsel %vm984_vm2, %v981_v19, %v983_v15 }
 0x292   :  { %v995_v29 = vadd.f32 %v987_v20, %v958_v61  ;;  %v996_v12 = vadd.f32 %v988_v5, %v959_v25 }
 0x294   :  { %v1012_v35 = vpop.permute.xlu1 %1011  ;;  %v1014_v53 = vpop.permute.xlu0 %1013 }
 0x295   :  { %v1022_v13 = vsel %vm1021_vm3, %v1012_v35, %v1014_v53 }
 0x296   :  { %v1030_v24 = vadd.f32 %v1022_v13, %v993_v33 }
 0x298   :  { %v1016_v18 = vpop.permute.xlu1 %1015  ;;  %v1018_v16 = vpop.permute.xlu0 %1017 }
 0x299   :  { %v1023_v27 = vsel %vm1021_vm3, %v1014_v53, %v1016_v18  ;;  %v1024_v46 = vsel %vm1021_vm3, %v1016_v18, %v1018_v16 }
 0x29a   :  { %v1031_v1 = vadd.f32 %v1023_v27, %v994_v10  ;;  %v1032_v17 = vadd.f32 %v1024_v46, %v995_v29 }
 0x29c   :  { %v1020_v30 = vpop.permute.xlu1 %1019  ;;  %v1049_v21 = vpop.permute.xlu0 %1048 }
 0x29d   :  { %v1025_v22 = vsel %vm1021_vm3, %v1018_v16, %v1020_v30 }
 0x29e   :  { %v1033_v26 = vadd.f32 %v1025_v22, %v996_v12 }
 0x2a0   :  { %v1051_v37 = vpop.permute.xlu1 %1050  ;;  %v1053_v38 = vpop.permute.xlu0 %1052 }
 0x2a1   :  { %v1059_v58 = vsel %vm1058_vm1, %v1049_v21, %v1051_v37  ;;  %v1060_v50 = vsel %vm1058_vm1, %v1051_v37, %v1053_v38 }
 0x2a2   :  { %v1067_v40 = vadd.f32 %v1059_v58, %v1030_v24  ;;  %v1068_v43 = vadd.f32 %v1060_v50, %v1031_v1 }
 0x2a4   :  { %v1055_v62 = vpop.permute.xlu1 %1054  ;;  %v1057_v2 = vpop.permute.xlu0 %1056 }
 0x2a5   :  { %v1061_v36 = vsel %vm1058_vm1, %v1053_v38, %v1055_v62  ;;  %v1062_v51 = vsel %vm1058_vm1, %v1055_v62, %v1057_v2 }
 0x2a6   :  { %v1069_v54 = vadd.f32 %v1061_v36, %v1032_v17  ;;  %v1070_v20 = vadd.f32 %v1062_v51, %v1033_v26 }
 0x2a8   :  { %v1086_v44 = vpop.permute.xlu1 %1085  ;;  %v1088_v45 = vpop.permute.xlu0 %1087 }
 0x2a9   :  { %v1096_v52 = vsel %vm1095_vm4, %v1086_v44, %v1088_v45 }
 0x2aa   :  { %v1104_v5 = vadd.f32 %v1096_v52, %v1067_v40 }
 0x2ac   :  { %v1090_v63 = vpop.permute.xlu1 %1089  ;;  %v1092_v6 = vpop.permute.xlu0 %1091 }
 0x2ad   :  { %v1097_v25 = vsel %vm1095_vm4, %v1088_v45, %v1090_v63  ;;  %v1098_v34 = vsel %vm1095_vm4, %v1090_v63, %v1092_v6 }
 0x2ae   :  { %v1105_v29 = vadd.f32 %v1097_v25, %v1068_v43  ;;  %v1106_v12 = vadd.f32 %v1098_v34, %v1069_v54 }
 0x2b0   :  { %v1094_v28 = vpop.permute.xlu1 %1093  ;;  %v1123_v41 = vpop.permute.xlu0 %1122 }
 0x2b1   :  { %v1099_v33 = vsel %vm1095_vm4, %v1092_v6, %v1094_v28 }
 0x2b2   :  { %v1107_v27 = vadd.f32 %v1099_v33, %v1070_v20 }
 0x2b4   :  { %v1125_v42 = vpop.permute.xlu1 %1124  ;;  %v1127_v23 = vpop.permute.xlu0 %1126 }
 0x2b5   :  { %v1133_v10 = vsel %vm1132_vm5, %v1123_v41, %v1125_v42  ;;  %v1134_v19 = vsel %vm1132_vm5, %v1125_v42, %v1127_v23 }
 0x2b6   :  { %v1141_v46 = vadd.f32 %v1133_v10, %v1104_v5  ;;  %v1142_v1 = vadd.f32 %v1134_v19, %v1105_v29 }
 0x2b8   :  { %v1129_v3 = vpop.permute.xlu1 %1128  ;;  %v1131_v7 = vpop.permute.xlu0 %1130 }
 0x2b9   :  { %v1135_v15 = vsel %vm1132_vm5, %v1127_v23, %v1129_v3  ;;  %v1136_v13 = vsel %vm1132_vm5, %v1129_v3, %v1131_v7 }
 0x2ba   :  { %v1143_v17 = vadd.f32 %v1135_v15, %v1106_v12  ;;  %v1144_v37 = vadd.f32 %v1136_v13, %v1107_v27 }
 0x2bc   :  { %v1160_v47 = vpop.permute.xlu1 %1159  ;;  %v1162_v48 = vpop.permute.xlu0 %1161 }
 0x2bd   :  { %v1170_v24 = vsel %vm1169_vm6, %v1160_v47, %v1162_v48 }
 0x2be   :  { %v1178_v38 = vadd.f32 %v1170_v24, %v1141_v46 }
 0x2c0   :  { %v1164_v49 = vpop.permute.xlu1 %1163  ;;  %v1166_v59 = vpop.permute.xlu0 %1165 }
 0x2c1   :  { %v1171_v18 = vsel %vm1169_vm6, %v1162_v48, %v1164_v49  ;;  %v1172_v16 = vsel %vm1169_vm6, %v1164_v49, %v1166_v59 }
 0x2c2   :  { %v1179_v62 = vadd.f32 %v1171_v18, %v1142_v1  ;;  %v1180_v2 = vadd.f32 %v1172_v16, %v1143_v17 }
 0x2c4   :  { %v1168_v55 = vpop.permute.xlu1 %1167  ;;  %v1197_v9 = vpop.permute.xlu0 %1196 }
 0x2c5   :  { %v1173_v30 = vsel %vm1169_vm6, %v1166_v59, %v1168_v55 }
 0x2c6   :  { %v1181_v42 = vadd.f32 %v1173_v30, %v1144_v37 }
 0x2c8   :  { %v1199_v4 = vpop.permute.xlu1 %1198  ;;  %v1201_v56 = vpop.permute.xlu0 %1200 }
 0x2c9   :  { %v1207_v21 = vsel %vm1206_vm7, %v1197_v9, %v1199_v4  ;;  %v1208_v22 = vsel %vm1206_vm7, %v1199_v4, %v1201_v56 }
 0x2ca   :  { %v1215_v23 = vadd.f32 %v1207_v21, %v1178_v38  ;;  %v1216_v3 = vadd.f32 %v1208_v22, %v1179_v62 }
 0x2cc   :  { %v1203_v0 = vpop.permute.xlu1 %1202  ;;  %v1205_v39 = vpop.permute.xlu0 %1204 }
 0x2cd   :  { %v1209_v26 = vsel %vm1206_vm7, %v1201_v56, %v1203_v0  ;;  %v1210_v63 = vsel %vm1206_vm7, %v1203_v0, %v1205_v39 }
 0x2ce   :  { %v1217_v7 = vadd.f32 %v1209_v26, %v1180_v2  ;;  %v1218_v55 = vadd.f32 %v1210_v63, %v1181_v42 }
 0x2d0   :  { %v1234_v31 = vpop.permute.xlu1 %1233  ;;  %v1236_v32 = vpop.permute.xlu0 %1235 }
 0x2d1   :  { %v1244_v6 = vsel %vm1243_vm8, %v1234_v31, %v1236_v32 }
 0x2d2   :  { %v1252_v9 = vadd.f32 %v1244_v6, %v1215_v23 }
 0x2d4   :  { %v1238_v57 = vpop.permute.xlu1 %1237  ;;  %v1240_v11 = vpop.permute.xlu0 %1239 }
 0x2d5   :  { %v1245_v28 = vsel %vm1243_vm8, %v1236_v32, %v1238_v57  ;;  %v1246_v41 = vsel %vm1243_vm8, %v1238_v57, %v1240_v11 }
 0x2d6   :  { %v1253_v4 = vadd.f32 %v1245_v28, %v1216_v3  ;;  %v1254_v56 = vadd.f32 %v1246_v41, %v1217_v7 }
 0x2d8   :  { %v1242_v8 = vpop.permute.xlu1 %1241  ;;  %v1271_v14 = vpop.permute.xlu0 %1270 }
 0x2d9   :  { %v1247_v47 = vsel %vm1243_vm8, %v1240_v11, %v1242_v8 }
 0x2da   :  { %v1255_v8 = vadd.f32 %v1247_v47, %v1218_v55 }
 0x2dc   :  { %v1273_v61 = vpop.permute.xlu1 %1272  ;;  %v1275_v60 = vpop.permute.xlu0 %1274 }
 0x2dd   :  { %v1281_v48 = vsel %vm1280_vm9, %v1271_v14, %v1273_v61  ;;  %v1282_v49 = vsel %vm1280_vm9, %v1273_v61, %v1275_v60 }
 0x2de   :  { %v1289_v14 = vadd.f32 %v1281_v48, %v1252_v9  ;;  %v1290_v58 = vadd.f32 %v1282_v49, %v1253_v4 }
 0x2e0   :  { %v1277_v35 = vpop.permute.xlu1 %1276  ;;  %v1279_v53 = vpop.permute.xlu0 %1278 }
 0x2e1   :  { %v1283_v59 = vsel %vm1280_vm9, %v1275_v60, %v1277_v35  ;;  %v1284_v31 = vsel %vm1280_vm9, %v1277_v35, %v1279_v53 }
 0x2e2   :  { %v1291_v50 = vadd.f32 %v1283_v59, %v1254_v56  ;;  %v1292_v36 = vadd.f32 %v1284_v31, %v1255_v8 }
 0x2e4   :  { %v1308_v44 = vpop.permute.xlu1 %1307  ;;  %v1310_v45 = vpop.permute.xlu0 %1309 }
 0x2e5   :  { %v1318_v32 = vsel %vm1317_vm10, %v1308_v44, %v1310_v45 }
 0x2e6   :  { %v1326_v61 = vadd.f32 %v1318_v32, %v1289_v14 }
 0x2e8   :  { %v1312_v0 = vpop.permute.xlu1 %1311  ;;  %v1314_v39 = vpop.permute.xlu0 %1313  ;;  %v1334_v40 = vrot.slane %v1326_v61, 4 }
 0x2e9   :  { %v1319_v57 = vsel %vm1317_vm10, %v1310_v45, %v1312_v0  ;;  %v1320_v11 = vsel %vm1317_vm10, %v1312_v0, %v1314_v39 }
 0x2ea   :  { %v1327_v60 = vadd.f32 %v1319_v57, %v1290_v58  ;;  %v1328_v51 = vadd.f32 %v1320_v11, %v1291_v50  ;;  %v1342_v10 = vadd.f32 %v1334_v40, %v1326_v61 }
 0x2ec   :  { %v1316_v52 = vpop.permute.xlu1 %1315  ;;  %v1335_v43 = vrot.slane %v1327_v60, 4  ;;  %v1336_v54 = vrot.slane %v1328_v51, 4 }
 0x2ed   :  { %v1321_v25 = vsel %vm1317_vm10, %v1314_v39, %v1316_v52 }
 0x2ee   :  { %v1329_v34 = vadd.f32 %v1321_v25, %v1292_v36  ;;  %v1343_v19 = vadd.f32 %v1335_v43, %v1327_v60  ;;  %v1344_v15 = vadd.f32 %v1336_v54, %v1328_v51 }
 0x2f0   :  { %v1337_v33 = vrot.slane %v1329_v34, 4 }
 0x2f2   :  { %v1345_v20 = vadd.f32 %v1337_v33, %v1329_v34 }
 0x2f5   :  { %v1350_v5 = vpop.permute.xlu0 %1349 }
 0x2f6   :  { %v1352_v29 = vadd.f32 %v1350_v5, %v1342_v10  ;;  %v1353_v12 = vadd.f32 %v1350_v5, %v1343_v19  ;;  %v1354_v35 = vadd.f32 %v1350_v5, %v1344_v15  ;;  %v1355_v53 = vadd.f32 %v1350_v5, %v1345_v20 }
 0x2f8   :  { %v1356_v13 = vmin.f32 %v1352_v29, 20.0  ;;  %v1357_v24 = vmin.f32 %v1353_v12, 20.0  ;;  %v1358_v18 = vmin.f32 %v1354_v35, 20.0  ;;  %v1359_v16 = vmin.f32 %v1355_v53, 20.0 }
 0x2fa   :  { %v1360_v27 = vmul.f32 1.442695, %v1356_v13  ;;  %v1362_v46 = vmul.f32 1.442695, %v1357_v24  ;;  %v1364_v1 = vmul.f32 1.442695, %v1358_v18 }
 0x2fb   :  { %v1366_v17 = vmul.f32 1.442695, %v1359_v16 }
 0x2fc   :  { %1542 = vpow2.f32 %v1360_v27 }
 0x2fd   :  { %1544 = vpow2.f32 %v1362_v46 }
 0x2fe   :  { %1546 = vpow2.f32 %v1364_v1 }
 0x2ff   :  { %1548 = vpow2.f32 %v1366_v17 }
 0x309   :  { %v1543_v30 = vpop.eup %1542 }
 0x30a   :  { %v1545_v21 = vpop.eup %1544  ;;  %v1368_v22 = vadd.f32 2.0, %v1543_v30 }
 0x30b   :  { %v1547_v26 = vpop.eup %1546  ;;  %v1369_v37 = vadd.f32 2.0, %v1545_v21 }
 0x30c   :  { %v1549_v38 = vpop.eup %1548  ;;  %v1370_v62 = vadd.f32 2.0, %v1547_v26  ;;  %v1372_v2 = vmul.f32 %v1543_v30, %v1368_v22 }
 0x30d   :  { %v1371_v44 = vadd.f32 2.0, %v1549_v38  ;;  %v1373_v45 = vmul.f32 %v1545_v21, %v1369_v37 }
 0x30e   :  { %v1374_v63 = vmul.f32 %v1547_v26, %v1370_v62  ;;  %v1376_v6 = vadd.f32 2.0, %v1372_v2 }
 0x30f   :  { %v1375_v28 = vmul.f32 %v1549_v38, %v1371_v44  ;;  %v1377_v41 = vadd.f32 2.0, %v1373_v45 }
 0x310   :  { %v1378_v42 = vadd.f32 2.0, %v1374_v63  ;;  %1550 = vrcp.f32 %v1376_v6 }
 0x311   :  { %v1379_v23 = vadd.f32 2.0, %v1375_v28  ;;  %1552 = vrcp.f32 %v1377_v41 }
 0x312   :  { %1554 = vrcp.f32 %v1378_v42 }
 0x313   :  { %1556 = vrcp.f32 %v1379_v23 }
 0x31d   :  { %v1551_v3 = vpop.eup %1550 }
 0x31e   :  { %v1553_v7 = vpop.eup %1552  ;;  %v1384_v47 = vmul.f32 %v1551_v3, %v1376_v6 }
 0x31f   :  { %v1555_v48 = vpop.eup %1554  ;;  %v1385_v49 = vmul.f32 %v1553_v7, %v1377_v41 }
 0x320   :  { %v1557_v59 = vpop.eup %1556  ;;  %v1386_v55 = vmul.f32 %v1555_v48, %v1378_v42  ;;  %v1388_v9 = vsub.f32 2.0, %v1384_v47 }
 0x321   :  { %v1387_v4 = vmul.f32 %v1557_v59, %v1379_v23  ;;  %v1389_v56 = vsub.f32 2.0, %v1385_v49 }
 0x322   :  { %v1390_v0 = vsub.f32 2.0, %v1386_v55  ;;  %v1392_v39 = vmul.f32 %v1551_v3, %v1388_v9 }
 0x323   :  { %v1391_v31 = vsub.f32 2.0, %v1387_v4  ;;  %v1393_v32 = vmul.f32 %v1553_v7, %v1389_v56 }
 0x324   :  { %v1394_v57 = vmul.f32 %v1555_v48, %v1390_v0  ;;  %v1396_v11 = vmul.f32 %v1392_v39, %v1372_v2 }
 0x325   :  { %v1395_v8 = vmul.f32 %v1557_v59, %v1391_v31  ;;  %v1397_v14 = vmul.f32 %v1393_v32, %v1373_v45 }
 0x326   :  { %v1398_v58 = vmul.f32 %v1394_v57, %v1374_v63  ;;  %v1400_v50 = vmul.f32 %v1396_v11, %v1352_v29 }
 0x327   :  { %v1399_v36 = vmul.f32 %v1395_v8, %v1375_v28  ;;  %v1401_v61 = vmul.f32 %v1397_v14, %v1353_v12 }
 0x328   :  { %v1402_v60 = vmul.f32 %v1398_v58, %v1354_v35  ;;  %v1408_v51 = vrot.slane %v1400_v50, 4 }
 0x329   :  { %v1403_v52 = vmul.f32 %v1399_v36, %v1355_v53  ;;  %v1409_v25 = vrot.slane %v1401_v61, 4 }
 0x32a   :  { %v1410_v34 = vrot.slane %v1402_v60, 4  ;;  %1416 = vst [vmem:[#allocation10] sm:$0xf0] %v1408_v51 }
 0x32b   :  { %v1411_v40 = vrot.slane %v1403_v52, 4  ;;  %1417 = vst [vmem:[#allocation10 + $0x8] sm:$0xf0] %v1409_v25 }
 0x32c   :  { %1418 = vst [vmem:[#allocation10 + $0x10] sm:$0xf0] %v1410_v34 }
 0x32d   :  { %1419 = vst [vmem:[#allocation10 + $0x18] sm:$0xf0] %v1411_v40 }
 0x32e   :  { %1619 = shalt.err (!%p1616_p5)
}
 0x32f   :  { %1429 = dma.vmem_to_hbm [thread:$0]  %s1427_s18, 512, %s2466_s5, [#allocation5]  }
 0x330   :  { %1634 = dma.done.wait [#allocation5], 512  }
 0x331   :  { %1635 = vsyncadd [#allocation5], 4294966784 }
 0x332   :  { %1433 = vsyncpa [#allocation4], 1 }
 0x333   :  { %1434 = vsyncpa [#allocation5], 1 }
 0x334   :  { %1435 = vsyncpa [#allocation6], 1 }
 0x335   :  { %1436 = vsyncpa [#allocation9], 1 }

</bundles_post_ra>
